<compile_context>
chip_gen: v7x
topology: tpu7x:2x2x1
jax: 0.10.0
libtpu: 0.0.40
codegen_flags: <defaults>
</compile_context>

<pallas_src>
import functools
import math

import jax
import jax.numpy as jnp
from jax import lax
from jax.experimental import pallas as pl
from jax.experimental.pallas import tpu as pltpu

PER_LAYER = ('wqkv', 'bqkv', 'wo', 'bo', 'ln1w', 'ln1b',
             'w1', 'b1', 'w2', 'b2', 'ln2w', 'ln2b')


def _round_up(x, m):
    return (x + m - 1) // m * m


def _pick_b_tile(B, S, max_rows=1024, prefer_even_nb=False, even_nb_min_rows=384):
    """Pick the batch tile.

    Default: largest divisor of B whose fused row count (b_tile*S) stays
    <= max_rows (~1024 rows keeps each layer step MXU-bound on v6e).
    With prefer_even_nb (v7x: 2 TensorCores share the 'parallel' batch axis),
    prefer a tile that yields an even number of batch blocks as long as each
    tile still has >= even_nb_min_rows rows.
    """
    divisors = [d for d in range(1, B + 1) if B % d == 0 and d * S <= max_rows]
    if not divisors:
        return 1
    best = max(divisors)
    if prefer_even_nb:
        even = [d for d in divisors
                if (B // d) % 2 == 0 and d * S >= even_nb_min_rows]
        if even:
            return max(even)
    return best


def _physical_vmem_bytes():
    """Physical per-core VMEM, with a conservative (v7x-sized) fallback."""
    try:
        info = pltpu.get_tpu_info()
        for name in ('vmem_capacity_bytes', 'vmem_size_bytes', 'vmem_bytes'):
            v = getattr(info, name, None)
            if v:
                return int(v)
    except Exception:
        pass
    return 64 * 1024 * 1024


def _mm(a, b):
    # bf16 operands, f32 accumulation on the MXU.
    return jnp.dot(a.astype(jnp.bfloat16), b, preferred_element_type=jnp.float32)


def _layer_norm(x, w, b, eps=1e-5):
    # Single-pass LN: both reductions come straight from x (no mean->center dep).
    n = x.shape[-1]
    inv_n = 1.0 / n
    mu = jnp.sum(x, axis=-1, keepdims=True) * inv_n
    ms = jnp.sum(x * x, axis=-1, keepdims=True) * inv_n
    var = jnp.maximum(ms - mu * mu, 0.0)
    return (x - mu) * lax.rsqrt(var + eps) * w + b


def transformer_kernel(
    x_ref, wp_ref, bp_ref,
    wqkv_ref, bqkv_ref, wo_ref, bo_ref,
    ln1w_ref, ln1b_ref, w1_ref, b1_ref, w2_ref, b2_ref, ln2w_ref, ln2b_ref,
    wh1_ref, bh1_ref, wh2_ref, bh2_ref,
    out_ref,
    h_ref, kbias_ref, ctx_ref,
    *, num_heads, problem, task):
  l = pl.program_id(1)
  n_layers = pl.num_programs(1)

  Bt, S, dim_in = x_ref.shape
  D = wp_ref.shape[1]
  H = num_heads
  Dh = D // H
  N = Bt * S
  NEG = -1e30  # finite mask bias: no -inf - (-inf) NaNs, no special-value VPU path

  # ---- first layer step: key-padding bias + input projection into VMEM scratch ----
  @pl.when(l == 0)
  def _init():
    xin = x_ref[...]                                        # (Bt, S, dim_in) f32
    pad = xin[:, :, 0] == -1.0                              # (Bt, S) padded keys
    kbias_ref[...] = jnp.where(pad, NEG, 0.0)[:, None, :]   # (Bt, 1, S) only
    xf = xin.reshape(N, dim_in)                             # fused batch*seq rows
    h_ref[...] = _mm(xf, wp_ref[...]) + bp_ref[...]         # (N, D) f32

  # ---- one encoder layer per grid step (post-LN, relu FFN) ----
  h = h_ref[...]                                            # (N, D) f32
  kbias = kbias_ref[...]                                    # (Bt, 1, S) f32

  # QKV projection; cast the slab to bf16 once (MXU operands are bf16 anyway).
  qkv = (_mm(h, wqkv_ref[0]) + bqkv_ref[0]).reshape(Bt, S, 3 * D)
  qkv = qkv.astype(jnp.bfloat16)                            # (Bt, S, 3D) bf16

  if problem == 'online':
    # Regenerated from iota each layer step (cheap VPU) instead of an (Bt,S,S)
    # f32 VMEM carry.
    row = lax.broadcasted_iota(jnp.int32, (S, S), 0)
    col = lax.broadcasted_iota(jnp.int32, (S, S), 1)
    causal = jnp.where(col > row, NEG, 0.0)[None, :, :]     # (1, S, S), triu(diag=1)

  for hd in range(H):
    qh = qkv[:, :, hd * Dh:(hd + 1) * Dh]                           # scaled q (bf16)
    kh = qkv[:, :, D + hd * Dh:D + (hd + 1) * Dh]
    vh = qkv[:, :, 2 * D + hd * Dh:2 * D + (hd + 1) * Dh]
    s = jnp.einsum('bqd,bkd->bqk', qh, kh,
                   preferred_element_type=jnp.float32)              # (Bt, S, S) f32
    s = s + kbias                                                   # key-padding mask
    if problem == 'online':
      s = s + causal                                                # causal mask
    m = jnp.max(s, axis=-1, keepdims=True)
    p = jnp.exp(s - m)
    denom = jnp.sum(p, axis=-1, keepdims=True)                      # (Bt, S, 1)
    ctx_h = jnp.einsum('bqk,bkd->bqd', p.astype(jnp.bfloat16), vh,
                       preferred_element_type=jnp.float32)          # (Bt, S, Dh)
    # Normalize after PV (O(S*Dh) EUP reciprocal vs O(S^2) VPU divide) and write
    # straight into the lane slice of the ctx scratch (no concatenate/relayout).
    ctx_ref[:, :, hd * Dh:(hd + 1) * Dh] = ctx_h * pl.reciprocal(denom, approx=True)

  ctx = ctx_ref[...].reshape(N, D)                                  # (N, D) f32
  attn_out = _mm(ctx, wo_ref[0]) + bo_ref[0]                        # (N, D)
  h = _layer_norm(h + attn_out, ln1w_ref[0], ln1b_ref[0])

  ff = jnp.maximum(_mm(h, w1_ref[0]) + b1_ref[0], 0.0)              # (N, FF)
  ff = ff.astype(jnp.bfloat16)                                      # halve the big slab
  ff = _mm(ff, w2_ref[0]) + b2_ref[0]                               # (N, D)
  h = _layer_norm(h + ff, ln2w_ref[0], ln2b_ref[0])
  h_ref[...] = h

  # ---- last layer step: pooling (one-shot) + output head ----
  @pl.when(l == n_layers - 1)
  def _head():
    if problem == 'one-shot':
      pad = x_ref[...][:, :, 0] == -1.0                    # (Bt, S)
      seq_m = jnp.where(pad, 0.0, 1.0)
      h3 = h.reshape(Bt, S, D)
      summed = jnp.sum(h3 * seq_m[:, :, None], axis=1)     # (Bt, D)
      d = jnp.maximum(jnp.sum(seq_m, axis=1, keepdims=True), 1.0)
      head_in = summed / d                                 # (Bt, D)
    else:
      head_in = h                                          # (N, D)

    hid = jnp.maximum(_mm(head_in, wh1_ref[...]) + bh1_ref[...], 0.0)
    out = _mm(hid, wh2_ref[...]) + bh2_ref[...]            # lane-dense (.., out_pad)
    if task == 'classification':
      # Head is negligible work; keep the exact divide (approx reciprocal could
      # nudge values a hair above 1.0).
      out = 1.0 / (1.0 + jnp.exp(-out))
    if problem == 'one-shot':
      out_ref[:, 0, :] = out                               # (Bt, out_pad)
    else:
      out_ref[...] = out.reshape(Bt, S, out_ref.shape[-1])


def transformer_forward(x, params, *, problem, task, num_heads, num_layers,
                        dim_output, b_tile=None):
  B, S, dim_input = x.shape
  D = params['wp'].shape[1]
  out_pad = params['wh2'].shape[1]
  dim_ff = params['w1'].shape[-1]

  phys_vmem = _physical_vmem_bytes()
  vmem_cap = int(phys_vmem * 0.85)     # headroom for Mosaic internal scratch

  if b_tile is None:
    # Small-VMEM chips (v7x, 64 MiB) have 2 TensorCores: prefer an even number
    # of batch blocks so the 'parallel' axis shards across both cores.
    b_tile = _pick_b_tile(B, S, max_rows=1024,
                          prefer_even_nb=(phys_vmem <= 64 * 1024 * 1024))
  assert B % b_tile == 0
  nb = B // b_tile

  order = ['wp', 'bp', 'wqkv', 'bqkv', 'wo', 'bo', 'ln1w', 'ln1b',
           'w1', 'b1', 'w2', 'b2', 'ln2w', 'ln2b', 'wh1', 'bh1', 'wh2', 'bh2']
  args = [x] + [params[k] for k in order]

  def rep_spec(a):                      # replicated (layer-independent) params
    nd = a.ndim
    return pl.BlockSpec(a.shape, lambda b, l, _nd=nd: (0,) * _nd)

  def layer_spec(a):                    # one layer block per grid step (streamed)
    nd = a.ndim
    return pl.BlockSpec((1,) + a.shape[1:],
                        lambda b, l, _nd=nd: (l,) + (0,) * (_nd - 1))

  in_specs = [pl.BlockSpec((b_tile, S, dim_input), lambda b, l: (b, 0, 0))]
  for k in order:
    in_specs.append(layer_spec(params[k]) if k in PER_LAYER else rep_spec(params[k]))

  if problem == 'one-shot':
    out_shape = jax.ShapeDtypeStruct((B, 1, out_pad), jnp.float32)
    out_spec = pl.BlockSpec((b_tile, 1, out_pad), lambda b, l: (b, 0, 0))
  else:
    out_shape = jax.ShapeDtypeStruct((B, S, out_pad), jnp.float32)
    out_spec = pl.BlockSpec((b_tile, S, out_pad), lambda b, l: (b, 0, 0))

  kernel = functools.partial(transformer_kernel, num_heads=num_heads,
                             problem=problem, task=task)

  # Rough VMEM budget: resident params + 2x (double-buffered) per-layer blocks
  # + activations/scratch, with 2x margin; floored at 32 MiB and clamped to
  # ~85% of the chip's physical VMEM (≈108 MiB on v5e/v6e, ≈54 MiB on v7x).
  N = b_tile * S
  per_layer_bytes = sum(params[k].nbytes // params[k].shape[0] for k in PER_LAYER)
  resident_bytes = sum(params[k].nbytes for k in order if k not in PER_LAYER)
  act_bytes = N * (4 * 6 * D            # f32 hidden-state / ctx / residual slabs
                   + 2 * 3 * D          # bf16 qkv slab
                   + 2 * dim_ff         # bf16 ffn slab
                   + 4 * out_pad + 4 * dim_input
                   + 4 * 2 * S)         # transient per-head scores/probs
  vmem_limit = int(min(max(2 * (resident_bytes + 2 * per_layer_bytes + act_bytes),
                           32 * 1024 * 1024), vmem_cap))

  out = pl.pallas_call(
      kernel,
      out_shape=out_shape,
      grid_spec=pltpu.PrefetchScalarGridSpec(
          num_scalar_prefetch=0,
          grid=(nb, num_layers),
          in_specs=in_specs,
          out_specs=out_spec,
          scratch_shapes=[
              pltpu.VMEM((b_tile * S, D), jnp.float32),   # hidden state carry
              pltpu.VMEM((b_tile, 1, S), jnp.float32),    # key-padding bias carry
              pltpu.VMEM((b_tile, S, D), jnp.float32),    # attention ctx (per head)
          ]),
      compiler_params=pltpu.CompilerParams(
          dimension_semantics=("parallel", "arbitrary"),
          vmem_limit_bytes=vmem_limit),
  )(*args)

  if problem == 'one-shot':
    return out[:, 0, :dim_output]
  return out[..., :dim_output]


def init_params(key, dim_input, dim_model, dim_output, num_layers, num_heads,
                dim_ff=2048, lane=128):
  """Synthetic PyTorch-Linear-style params, pre-transformed for the kernel.

  Weights are (fan_in, fan_out) bf16; biases / LN params stay f32.
  The 1/sqrt(Dh) attention scale is folded into the Q projection, and the head
  is zero-padded to lane-dense widths (exact on the first dim_output columns).
  """
  D = dim_model
  Dh = D // num_heads
  scale = 1.0 / math.sqrt(Dh)
  hid = D + 1
  hid_pad = _round_up(hid, lane)
  out_pad = _round_up(dim_output, lane)

  keys = iter(jax.random.split(key, 4 + 4 * num_layers))

  def linear(kk, fin, fout):
    kw, kb = jax.random.split(kk)
    bound = 1.0 / math.sqrt(fin)
    w = jax.random.uniform(kw, (fin, fout), jnp.float32, -bound, bound)
    b = jax.random.uniform(kb, (1, fout), jnp.float32, -bound, bound)
    return w, b

  wp, bp = linear(next(keys), dim_input, D)

  wqkv, bqkv, wo, bo, w1, b1, w2, b2 = ([] for _ in range(8))
  for _ in range(num_layers):
    a, c = linear(next(keys), D, 3 * D)
    a = a.at[:, :D].multiply(scale)      # fold attention scale into Q weights
    c = c.at[:, :D].multiply(scale)      # ... and Q bias
    wqkv.append(a); bqkv.append(c)
    a, c = linear(next(keys), D, D);      wo.append(a); bo.append(c)
    a, c = linear(next(keys), D, dim_ff); w1.append(a); b1.append(c)
    a, c = linear(next(keys), dim_ff, D); w2.append(a); b2.append(c)

  wh1, bh1 = linear(next(keys), D, hid)
  wh2, bh2 = linear(next(keys), hid, dim_output)
  wh1 = jnp.pad(wh1, ((0, 0), (0, hid_pad - hid)))
  bh1 = jnp.pad(bh1, ((0, 0), (0, hid_pad - hid)))
  wh2 = jnp.pad(wh2, ((0, hid_pad - hid), (0, out_pad - dim_output)))
  bh2 = jnp.pad(bh2, ((0, 0), (0, out_pad - dim_output)))

  L = num_layers
  bf = jnp.bfloat16
  return dict(
      wp=wp.astype(bf), bp=bp,
      wqkv=jnp.stack(wqkv).astype(bf), bqkv=jnp.stack(bqkv),
      wo=jnp.stack(wo).astype(bf), bo=jnp.stack(bo),
      ln1w=jnp.ones((L, 1, D), jnp.float32),
      ln1b=jnp.zeros((L, 1, D), jnp.float32),
      w1=jnp.stack(w1).astype(bf), b1=jnp.stack(b1),
      w2=jnp.stack(w2).astype(bf), b2=jnp.stack(b2),
      ln2w=jnp.ones((L, 1, D), jnp.float32),
      ln2b=jnp.zeros((L, 1, D), jnp.float32),
      wh1=wh1.astype(bf), bh1=bh1, wh2=wh2.astype(bf), bh2=bh2,
  )


if __name__ == "__main__":
  task, problem = 'classification', 'online'
  B, S = 2, 8                       # S a multiple of 8 keeps the (B*S, D) flatten free
  dim_input, dim_model, dim_output = 8, 32, 4
  num_heads, num_layers = 2, 2
  assert dim_model % num_heads == 0

  key = jax.random.PRNGKey(0)
  kx, kp = jax.random.split(key)
  x = jax.random.normal(kx, (B, S, dim_input), jnp.float32)
  # One padded timestep (feature-0 == -1) to exercise the key-padding mask.
  x = x.at[0, S - 1, 0].set(-1.0)

  params = init_params(kp, dim_input, dim_model, dim_output, num_layers, num_heads)

  out = transformer_forward(x, params, problem=problem, task=task,
                            num_heads=num_heads, num_layers=num_layers,
                            dim_output=dim_output)
  out = jax.block_until_ready(out)
  assert out.shape == (B, S, dim_output)
  assert bool(jnp.all(jnp.isfinite(out)))
  assert bool(jnp.all((out >= 0.0) & (out <= 1.0)))       # sigmoid range

  # Also exercise the 'one-shot' + 'regression' path.
  out2 = transformer_forward(x, params, problem='one-shot', task='regression',
                             num_heads=num_heads, num_layers=num_layers,
                             dim_output=dim_output)
  out2 = jax.block_until_ready(out2)
  assert out2.shape == (B, dim_output)
  assert bool(jnp.all(jnp.isfinite(out2)))

  print("KERNEL_OK")
</pallas_src>

<mosaic_0001>
module attributes {stable_mosaic.version = 11 : i64} {
  func.func @transformer_kernel(%arg0: i32, %arg1: i32, %arg2: memref<2x8x8xf32, #tpu.memory_space<vmem>>, %arg3: memref<8x32xbf16, #tpu.memory_space<vmem>>, %arg4: memref<1x32xf32, #tpu.memory_space<vmem>>, %arg5: memref<1x32x96xbf16, #tpu.memory_space<vmem>>, %arg6: memref<1x1x96xf32, #tpu.memory_space<vmem>>, %arg7: memref<1x32x32xbf16, #tpu.memory_space<vmem>>, %arg8: memref<1x1x32xf32, #tpu.memory_space<vmem>>, %arg9: memref<1x1x32xf32, #tpu.memory_space<vmem>>, %arg10: memref<1x1x32xf32, #tpu.memory_space<vmem>>, %arg11: memref<1x32x2048xbf16, #tpu.memory_space<vmem>>, %arg12: memref<1x1x2048xf32, #tpu.memory_space<vmem>>, %arg13: memref<1x2048x32xbf16, #tpu.memory_space<vmem>>, %arg14: memref<1x1x32xf32, #tpu.memory_space<vmem>>, %arg15: memref<1x1x32xf32, #tpu.memory_space<vmem>>, %arg16: memref<1x1x32xf32, #tpu.memory_space<vmem>>, %arg17: memref<32x128xbf16, #tpu.memory_space<vmem>>, %arg18: memref<1x128xf32, #tpu.memory_space<vmem>>, %arg19: memref<128x128xbf16, #tpu.memory_space<vmem>>, %arg20: memref<1x128xf32, #tpu.memory_space<vmem>>, %arg21: memref<2x8x128xf32, #tpu.memory_space<vmem>>, %arg22: memref<16x32xf32, #tpu.memory_space<vmem>>, %arg23: memref<2x1x8xf32, #tpu.memory_space<vmem>>, %arg24: memref<2x8x32xf32, #tpu.memory_space<vmem>>) attributes {dimension_semantics = [#tpu.dimension_semantics<parallel>, #tpu.dimension_semantics<arbitrary>], iteration_bounds = array<i64: 1, 2>, scalar_prefetch = 0 : i64, scratch_operands = 3 : i64, tpu.core_type = #tpu.core_type<tc>, window_params = [{transform_indices = @transform_0, window_bounds = array<i64: 2, 8, 8>}, {pipeline_mode = #tpu.pipeline_mode<synchronous>, transform_indices = @transform_1, window_bounds = array<i64: 8, 32>}, {pipeline_mode = #tpu.pipeline_mode<synchronous>, transform_indices = @transform_2, window_bounds = array<i64: 1, 32>}, {transform_indices = @transform_3, window_bounds = array<i64: 1, 32, 96>}, {transform_indices = @transform_4, window_bounds = array<i64: 1, 1, 96>}, {transform_indices = @transform_5, window_bounds = array<i64: 1, 32, 32>}, {transform_indices = @transform_6, window_bounds = array<i64: 1, 1, 32>}, {transform_indices = @transform_7, window_bounds = array<i64: 1, 1, 32>}, {transform_indices = @transform_8, window_bounds = array<i64: 1, 1, 32>}, {transform_indices = @transform_9, window_bounds = array<i64: 1, 32, 2048>}, {transform_indices = @transform_10, window_bounds = array<i64: 1, 1, 2048>}, {transform_indices = @transform_11, window_bounds = array<i64: 1, 2048, 32>}, {transform_indices = @transform_12, window_bounds = array<i64: 1, 1, 32>}, {transform_indices = @transform_13, window_bounds = array<i64: 1, 1, 32>}, {transform_indices = @transform_14, window_bounds = array<i64: 1, 1, 32>}, {pipeline_mode = #tpu.pipeline_mode<synchronous>, transform_indices = @transform_15, window_bounds = array<i64: 32, 128>}, {pipeline_mode = #tpu.pipeline_mode<synchronous>, transform_indices = @transform_16, window_bounds = array<i64: 1, 128>}, {pipeline_mode = #tpu.pipeline_mode<synchronous>, transform_indices = @transform_17, window_bounds = array<i64: 128, 128>}, {pipeline_mode = #tpu.pipeline_mode<synchronous>, transform_indices = @transform_18, window_bounds = array<i64: 1, 128>}, {transform_indices = @transform_19, window_bounds = array<i64: 2, 8, 128>}]} {
    %c0_i32 = arith.constant 0 : i32
    %0 = arith.cmpi eq, %arg1, %c0_i32 : i32
    %1 = arith.extui %0 : i1 to i32
    %c0_i32_0 = arith.constant 0 : i32
    %2 = arith.cmpi ne, %1, %c0_i32_0 : i32
    scf.if %2 {
      %c0_78 = arith.constant 0 : index
      %c0_79 = arith.constant 0 : index
      %c0_80 = arith.constant 0 : index
      %154 = vector.load %arg2[%c0_78, %c0_79, %c0_80] : memref<2x8x8xf32, #tpu.memory_space<vmem>>, vector<2x8x8xf32>
      %155 = vector.extract_strided_slice %154 {offsets = [0, 0, 0], sizes = [2, 8, 1], strides = [1, 1, 1]} : vector<2x8x8xf32> to vector<2x8x1xf32>
      %156 = vector.shape_cast %155 : vector<2x8x1xf32> to vector<2x8xf32>
      %cst_81 = arith.constant -1.000000e+00 : f32
      %157 = vector.broadcast %cst_81 : f32 to vector<2x8xf32>
      %158 = arith.cmpf oeq, %156, %157 : vector<2x8xf32>
      %cst_82 = arith.constant -1.000000e+30 : f32
      %cst_83 = arith.constant 0.000000e+00 : f32
      %159 = vector.broadcast %cst_82 : f32 to vector<2x8xf32>
      %160 = vector.broadcast %cst_83 : f32 to vector<2x8xf32>
      %161 = arith.select %158, %159, %160 : vector<2x8xi1>, vector<2x8xf32>
      %162 = vector.shape_cast %161 : vector<2x8xf32> to vector<2x1x8xf32>
      %c0_84 = arith.constant 0 : index
      %c0_85 = arith.constant 0 : index
      %c0_86 = arith.constant 0 : index
      %163 = vector.load %arg23[%c0_84, %c0_85, %c0_86] : memref<2x1x8xf32, #tpu.memory_space<vmem>>, vector<2x1x8xf32>
      tpu.vector_store %arg23[%c0_84, %c0_85, %c0_86], %162 {strides = array<i32>} : memref<2x1x8xf32, #tpu.memory_space<vmem>>, vector<2x1x8xf32>,
      %164 = vector.shape_cast %154 : vector<2x8x8xf32> to vector<16x8xf32>
      %c0_87 = arith.constant 0 : index
      %c0_88 = arith.constant 0 : index
      %165 = vector.load %arg3[%c0_87, %c0_88] : memref<8x32xbf16, #tpu.memory_space<vmem>>, vector<8x32xbf16>
      %166 = arith.truncf %164 : vector<16x8xf32> to vector<16x8xbf16>
      %cst_89 = arith.constant dense<0.000000e+00> : vector<16x32xf32>
      %167 = tpu.matmul %166, %165, %cst_89 {dimension_numbers = #tpu.dot_dimension_numbers<[1], [0], [0], [1], [0, 0, 1, 1], [], []>} : vector<16x8xbf16>, vector<8x32xbf16>, vector<16x32xf32> -> vector<16x32xf32>
      %c0_90 = arith.constant 0 : index
      %c0_91 = arith.constant 0 : index
      %168 = vector.load %arg4[%c0_90, %c0_91] : memref<1x32xf32, #tpu.memory_space<vmem>>, vector<1x32xf32>
      %169 = vector.broadcast %168 : vector<1x32xf32> to vector<16x32xf32>
      %170 = arith.addf %167, %169 : vector<16x32xf32>
      %c0_92 = arith.constant 0 : index
      %c0_93 = arith.constant 0 : index
      %171 = vector.load %arg22[%c0_92, %c0_93] : memref<16x32xf32, #tpu.memory_space<vmem>>, vector<16x32xf32>
      tpu.vector_store %arg22[%c0_92, %c0_93], %170 {strides = array<i32>} : memref<16x32xf32, #tpu.memory_space<vmem>>, vector<16x32xf32>,
    } else {
    }
    %c0 = arith.constant 0 : index
    %c0_1 = arith.constant 0 : index
    %3 = vector.load %arg22[%c0, %c0_1] : memref<16x32xf32, #tpu.memory_space<vmem>>, vector<16x32xf32>
    %c0_2 = arith.constant 0 : index
    %c0_3 = arith.constant 0 : index
    %c0_4 = arith.constant 0 : index
    %4 = vector.load %arg23[%c0_2, %c0_3, %c0_4] : memref<2x1x8xf32, #tpu.memory_space<vmem>>, vector<2x1x8xf32>
    %c0_5 = arith.constant 0 : index
    %c0_6 = arith.constant 0 : index
    %c0_7 = arith.constant 0 : index
    %5 = vector.load %arg5[%c0_5, %c0_6, %c0_7] : memref<1x32x96xbf16, #tpu.memory_space<vmem>>, vector<1x32x96xbf16>
    %6 = vector.shape_cast %5 : vector<1x32x96xbf16> to vector<32x96xbf16>
    %7 = arith.truncf %3 : vector<16x32xf32> to vector<16x32xbf16>
    %cst = arith.constant dense<0.000000e+00> : vector<16x96xf32>
    %8 = tpu.matmul %7, %6, %cst {dimension_numbers = #tpu.dot_dimension_numbers<[1], [0], [0], [1], [0, 0, 1, 1], [], []>} : vector<16x32xbf16>, vector<32x96xbf16>, vector<16x96xf32> -> vector<16x96xf32>
    %c0_8 = arith.constant 0 : index
    %c0_9 = arith.constant 0 : index
    %c0_10 = arith.constant 0 : index
    %9 = vector.load %arg6[%c0_8, %c0_9, %c0_10] : memref<1x1x96xf32, #tpu.memory_space<vmem>>, vector<1x1x96xf32>
    %10 = vector.shape_cast %9 : vector<1x1x96xf32> to vector<1x96xf32>
    %11 = vector.broadcast %10 : vector<1x96xf32> to vector<16x96xf32>
    %12 = arith.addf %8, %11 : vector<16x96xf32>
    %13 = vector.shape_cast %12 : vector<16x96xf32> to vector<2x8x96xf32>
    %14 = arith.truncf %13 : vector<2x8x96xf32> to vector<2x8x96xbf16>
    %15 = tpu.iota {dimensions = array<i32: 0>} : vector<8x8xi32>
    %16 = tpu.iota {dimensions = array<i32: 1>} : vector<8x8xi32>
    %17 = arith.cmpi sgt, %16, %15 : vector<8x8xi32>
    %cst_11 = arith.constant -1.000000e+30 : f32
    %cst_12 = arith.constant 0.000000e+00 : f32
    %18 = vector.broadcast %cst_11 : f32 to vector<8x8xf32>
    %19 = vector.broadcast %cst_12 : f32 to vector<8x8xf32>
    %20 = arith.select %17, %18, %19 : vector<8x8xi1>, vector<8x8xf32>
    %21 = vector.shape_cast %20 : vector<8x8xf32> to vector<1x8x8xf32>
    %22 = vector.extract_strided_slice %14 {offsets = [0, 0, 0], sizes = [2, 8, 16], strides = [1, 1, 1]} : vector<2x8x96xbf16> to vector<2x8x16xbf16>
    %23 = vector.extract_strided_slice %14 {offsets = [0, 0, 32], sizes = [2, 8, 16], strides = [1, 1, 1]} : vector<2x8x96xbf16> to vector<2x8x16xbf16>
    %24 = vector.extract_strided_slice %14 {offsets = [0, 0, 64], sizes = [2, 8, 16], strides = [1, 1, 1]} : vector<2x8x96xbf16> to vector<2x8x16xbf16>
    "tpu.trace_start"() <{level = 10 : i32, message = "bqd,bkd->bqk"}> : () -> ()
    %cst_13 = arith.constant dense<0.000000e+00> : vector<2x8x8xf32>
    %25 = tpu.matmul %22, %23, %cst_13 {dimension_numbers = #tpu.dot_dimension_numbers<[2], [2], [1], [1], [0, 0, 0, 1, 1, 1], [0], [0]>} : vector<2x8x16xbf16>, vector<2x8x16xbf16>, vector<2x8x8xf32> -> vector<2x8x8xf32>
    "tpu.trace_stop"() : () -> ()
    %26 = vector.broadcast %4 : vector<2x1x8xf32> to vector<2x8x8xf32>
    %27 = arith.addf %25, %26 : vector<2x8x8xf32>
    %28 = vector.broadcast %21 : vector<1x8x8xf32> to vector<2x8x8xf32>
    %29 = arith.addf %27, %28 : vector<2x8x8xf32>
    %cst_14 = arith.constant dense<0xFF800000> : vector<2x8xf32>
    %30 = vector.multi_reduction <maximumf>, %29, %cst_14 [2] : vector<2x8x8xf32> to vector<2x8xf32>
    %31 = vector.shape_cast %30 : vector<2x8xf32> to vector<2x8x1xf32>
    %32 = vector.broadcast %31 : vector<2x8x1xf32> to vector<2x8x8xf32>
    %33 = arith.subf %29, %32 : vector<2x8x8xf32>
    %34 = math.exp %33 : vector<2x8x8xf32>
    %cst_15 = arith.constant dense<0.000000e+00> : vector<2x8xf32>
    %35 = vector.multi_reduction <add>, %34, %cst_15 [2] : vector<2x8x8xf32> to vector<2x8xf32>
    %36 = vector.shape_cast %35 : vector<2x8xf32> to vector<2x8x1xf32>
    %37 = arith.truncf %34 : vector<2x8x8xf32> to vector<2x8x8xbf16>
    "tpu.trace_start"() <{level = 10 : i32, message = "bqk,bkd->bqd"}> : () -> ()
    %cst_16 = arith.constant dense<0.000000e+00> : vector<2x8x16xf32>
    %38 = tpu.matmul %37, %24, %cst_16 {dimension_numbers = #tpu.dot_dimension_numbers<[2], [1], [1], [2], [0, 0, 0, 1, 1, 2], [0], [0]>} : vector<2x8x8xbf16>, vector<2x8x16xbf16>, vector<2x8x16xf32> -> vector<2x8x16xf32>
    "tpu.trace_stop"() : () -> ()
    %39 = tpu.reciprocal %36 {approx = true} : vector<2x8x1xf32> -> vector<2x8x1xf32>
    %40 = vector.broadcast %39 : vector<2x8x1xf32> to vector<2x8x16xf32>
    %41 = arith.mulf %38, %40 : vector<2x8x16xf32>
    %c0_17 = arith.constant 0 : index
    %c0_18 = arith.constant 0 : index
    %c0_19 = arith.constant 0 : index
    %42 = vector.load %arg24[%c0_17, %c0_18, %c0_19] : memref<2x8x32xf32, #tpu.memory_space<vmem>>, vector<2x8x16xf32>
    tpu.vector_store %arg24[%c0_17, %c0_18, %c0_19], %41 {strides = array<i32>} : memref<2x8x32xf32, #tpu.memory_space<vmem>>, vector<2x8x16xf32>,
    %43 = vector.extract_strided_slice %14 {offsets = [0, 0, 16], sizes = [2, 8, 16], strides = [1, 1, 1]} : vector<2x8x96xbf16> to vector<2x8x16xbf16>
    %44 = vector.extract_strided_slice %14 {offsets = [0, 0, 48], sizes = [2, 8, 16], strides = [1, 1, 1]} : vector<2x8x96xbf16> to vector<2x8x16xbf16>
    %45 = vector.extract_strided_slice %14 {offsets = [0, 0, 80], sizes = [2, 8, 16], strides = [1, 1, 1]} : vector<2x8x96xbf16> to vector<2x8x16xbf16>
    "tpu.trace_start"() <{level = 10 : i32, message = "bqd,bkd->bqk"}> : () -> ()
    %cst_20 = arith.constant dense<0.000000e+00> : vector<2x8x8xf32>
    %46 = tpu.matmul %43, %44, %cst_20 {dimension_numbers = #tpu.dot_dimension_numbers<[2], [2], [1], [1], [0, 0, 0, 1, 1, 1], [0], [0]>} : vector<2x8x16xbf16>, vector<2x8x16xbf16>, vector<2x8x8xf32> -> vector<2x8x8xf32>
    "tpu.trace_stop"() : () -> ()
    %47 = vector.broadcast %4 : vector<2x1x8xf32> to vector<2x8x8xf32>
    %48 = arith.addf %46, %47 : vector<2x8x8xf32>
    %49 = vector.broadcast %21 : vector<1x8x8xf32> to vector<2x8x8xf32>
    %50 = arith.addf %48, %49 : vector<2x8x8xf32>
    %cst_21 = arith.constant dense<0xFF800000> : vector<2x8xf32>
    %51 = vector.multi_reduction <maximumf>, %50, %cst_21 [2] : vector<2x8x8xf32> to vector<2x8xf32>
    %52 = vector.shape_cast %51 : vector<2x8xf32> to vector<2x8x1xf32>
    %53 = vector.broadcast %52 : vector<2x8x1xf32> to vector<2x8x8xf32>
    %54 = arith.subf %50, %53 : vector<2x8x8xf32>
    %55 = math.exp %54 : vector<2x8x8xf32>
    %cst_22 = arith.constant dense<0.000000e+00> : vector<2x8xf32>
    %56 = vector.multi_reduction <add>, %55, %cst_22 [2] : vector<2x8x8xf32> to vector<2x8xf32>
    %57 = vector.shape_cast %56 : vector<2x8xf32> to vector<2x8x1xf32>
    %58 = arith.truncf %55 : vector<2x8x8xf32> to vector<2x8x8xbf16>
    "tpu.trace_start"() <{level = 10 : i32, message = "bqk,bkd->bqd"}> : () -> ()
    %cst_23 = arith.constant dense<0.000000e+00> : vector<2x8x16xf32>
    %59 = tpu.matmul %58, %45, %cst_23 {dimension_numbers = #tpu.dot_dimension_numbers<[2], [1], [1], [2], [0, 0, 0, 1, 1, 2], [0], [0]>} : vector<2x8x8xbf16>, vector<2x8x16xbf16>, vector<2x8x16xf32> -> vector<2x8x16xf32>
    "tpu.trace_stop"() : () -> ()
    %60 = tpu.reciprocal %57 {approx = true} : vector<2x8x1xf32> -> vector<2x8x1xf32>
    %61 = vector.broadcast %60 : vector<2x8x1xf32> to vector<2x8x16xf32>
    %62 = arith.mulf %59, %61 : vector<2x8x16xf32>
    %c0_24 = arith.constant 0 : index
    %c0_25 = arith.constant 0 : index
    %c16 = arith.constant 16 : index
    %63 = vector.load %arg24[%c0_24, %c0_25, %c16] : memref<2x8x32xf32, #tpu.memory_space<vmem>>, vector<2x8x16xf32>
    tpu.vector_store %arg24[%c0_24, %c0_25, %c16], %62 {strides = array<i32>} : memref<2x8x32xf32, #tpu.memory_space<vmem>>, vector<2x8x16xf32>,
    %c0_26 = arith.constant 0 : index
    %c0_27 = arith.constant 0 : index
    %c0_28 = arith.constant 0 : index
    %64 = vector.load %arg24[%c0_26, %c0_27, %c0_28] : memref<2x8x32xf32, #tpu.memory_space<vmem>>, vector<2x8x32xf32>
    %65 = vector.shape_cast %64 : vector<2x8x32xf32> to vector<16x32xf32>
    %c0_29 = arith.constant 0 : index
    %c0_30 = arith.constant 0 : index
    %c0_31 = arith.constant 0 : index
    %66 = vector.load %arg7[%c0_29, %c0_30, %c0_31] : memref<1x32x32xbf16, #tpu.memory_space<vmem>>, vector<1x32x32xbf16>
    %67 = vector.shape_cast %66 : vector<1x32x32xbf16> to vector<32x32xbf16>
    %68 = arith.truncf %65 : vector<16x32xf32> to vector<16x32xbf16>
    %cst_32 = arith.constant dense<0.000000e+00> : vector<16x32xf32>
    %69 = tpu.matmul %68, %67, %cst_32 {dimension_numbers = #tpu.dot_dimension_numbers<[1], [0], [0], [1], [0, 0, 1, 1], [], []>} : vector<16x32xbf16>, vector<32x32xbf16>, vector<16x32xf32> -> vector<16x32xf32>
    %c0_33 = arith.constant 0 : index
    %c0_34 = arith.constant 0 : index
    %c0_35 = arith.constant 0 : index
    %70 = vector.load %arg8[%c0_33, %c0_34, %c0_35] : memref<1x1x32xf32, #tpu.memory_space<vmem>>, vector<1x1x32xf32>
    %71 = vector.shape_cast %70 : vector<1x1x32xf32> to vector<1x32xf32>
    %72 = vector.broadcast %71 : vector<1x32xf32> to vector<16x32xf32>
    %73 = arith.addf %69, %72 : vector<16x32xf32>
    %74 = arith.addf %3, %73 : vector<16x32xf32>
    %c0_36 = arith.constant 0 : index
    %c0_37 = arith.constant 0 : index
    %c0_38 = arith.constant 0 : index
    %75 = vector.load %arg9[%c0_36, %c0_37, %c0_38] : memref<1x1x32xf32, #tpu.memory_space<vmem>>, vector<1x1x32xf32>
    %76 = vector.shape_cast %75 : vector<1x1x32xf32> to vector<1x32xf32>
    %c0_39 = arith.constant 0 : index
    %c0_40 = arith.constant 0 : index
    %c0_41 = arith.constant 0 : index
    %77 = vector.load %arg10[%c0_39, %c0_40, %c0_41] : memref<1x1x32xf32, #tpu.memory_space<vmem>>, vector<1x1x32xf32>
    %78 = vector.shape_cast %77 : vector<1x1x32xf32> to vector<1x32xf32>
    %cst_42 = arith.constant dense<0.000000e+00> : vector<16xf32>
    %79 = vector.multi_reduction <add>, %74, %cst_42 [1] : vector<16x32xf32> to vector<16xf32>
    %80 = vector.shape_cast %79 : vector<16xf32> to vector<16x1xf32>
    %cst_43 = arith.constant 3.125000e-02 : f32
    %81 = vector.broadcast %cst_43 : f32 to vector<16x1xf32>
    %82 = arith.mulf %80, %81 : vector<16x1xf32>
    %83 = arith.mulf %74, %74 : vector<16x32xf32>
    %cst_44 = arith.constant dense<0.000000e+00> : vector<16xf32>
    %84 = vector.multi_reduction <add>, %83, %cst_44 [1] : vector<16x32xf32> to vector<16xf32>
    %85 = vector.shape_cast %84 : vector<16xf32> to vector<16x1xf32>
    %cst_45 = arith.constant 3.125000e-02 : f32
    %86 = vector.broadcast %cst_45 : f32 to vector<16x1xf32>
    %87 = arith.mulf %85, %86 : vector<16x1xf32>
    %88 = arith.mulf %82, %82 : vector<16x1xf32>
    %89 = arith.subf %87, %88 : vector<16x1xf32>
    %cst_46 = arith.constant 0.000000e+00 : f32
    %90 = vector.broadcast %cst_46 : f32 to vector<16x1xf32>
    %91 = arith.maximumf %89, %90 : vector<16x1xf32>
    %92 = vector.broadcast %82 : vector<16x1xf32> to vector<16x32xf32>
    %93 = arith.subf %74, %92 : vector<16x32xf32>
    %cst_47 = arith.constant 9.99999974E-6 : f32
    %94 = vector.broadcast %cst_47 : f32 to vector<16x1xf32>
    %95 = arith.addf %91, %94 : vector<16x1xf32>
    %96 = math.rsqrt %95 : vector<16x1xf32>
    %97 = vector.broadcast %96 : vector<16x1xf32> to vector<16x32xf32>
    %98 = arith.mulf %93, %97 : vector<16x32xf32>
    %99 = vector.broadcast %76 : vector<1x32xf32> to vector<16x32xf32>
    %100 = arith.mulf %98, %99 : vector<16x32xf32>
    %101 = vector.broadcast %78 : vector<1x32xf32> to vector<16x32xf32>
    %102 = arith.addf %100, %101 : vector<16x32xf32>
    %c0_48 = arith.constant 0 : index
    %c0_49 = arith.constant 0 : index
    %c0_50 = arith.constant 0 : index
    %103 = vector.load %arg11[%c0_48, %c0_49, %c0_50] : memref<1x32x2048xbf16, #tpu.memory_space<vmem>>, vector<1x32x2048xbf16>
    %104 = vector.shape_cast %103 : vector<1x32x2048xbf16> to vector<32x2048xbf16>
    %105 = arith.truncf %102 : vector<16x32xf32> to vector<16x32xbf16>
    %cst_51 = arith.constant dense<0.000000e+00> : vector<16x2048xf32>
    %106 = tpu.matmul %105, %104, %cst_51 {dimension_numbers = #tpu.dot_dimension_numbers<[1], [0], [0], [1], [0, 0, 1, 1], [], []>} : vector<16x32xbf16>, vector<32x2048xbf16>, vector<16x2048xf32> -> vector<16x2048xf32>
    %c0_52 = arith.constant 0 : index
    %c0_53 = arith.constant 0 : index
    %c0_54 = arith.constant 0 : index
    %107 = vector.load %arg12[%c0_52, %c0_53, %c0_54] : memref<1x1x2048xf32, #tpu.memory_space<vmem>>, vector<1x1x2048xf32>
    %108 = vector.shape_cast %107 : vector<1x1x2048xf32> to vector<1x2048xf32>
    %109 = vector.broadcast %108 : vector<1x2048xf32> to vector<16x2048xf32>
    %110 = arith.addf %106, %109 : vector<16x2048xf32>
    %cst_55 = arith.constant 0.000000e+00 : f32
    %111 = vector.broadcast %cst_55 : f32 to vector<16x2048xf32>
    %112 = arith.maximumf %110, %111 : vector<16x2048xf32>
    %113 = arith.truncf %112 : vector<16x2048xf32> to vector<16x2048xbf16>
    %c0_56 = arith.constant 0 : index
    %c0_57 = arith.constant 0 : index
    %c0_58 = arith.constant 0 : index
    %114 = vector.load %arg13[%c0_56, %c0_57, %c0_58] : memref<1x2048x32xbf16, #tpu.memory_space<vmem>>, vector<1x2048x32xbf16>
    %115 = vector.shape_cast %114 : vector<1x2048x32xbf16> to vector<2048x32xbf16>
    %cst_59 = arith.constant dense<0.000000e+00> : vector<16x32xf32>
    %116 = tpu.matmul %113, %115, %cst_59 {dimension_numbers = #tpu.dot_dimension_numbers<[1], [0], [0], [1], [0, 0, 1, 1], [], []>} : vector<16x2048xbf16>, vector<2048x32xbf16>, vector<16x32xf32> -> vector<16x32xf32>
    %c0_60 = arith.constant 0 : index
    %c0_61 = arith.constant 0 : index
    %c0_62 = arith.constant 0 : index
    %117 = vector.load %arg14[%c0_60, %c0_61, %c0_62] : memref<1x1x32xf32, #tpu.memory_space<vmem>>, vector<1x1x32xf32>
    %118 = vector.shape_cast %117 : vector<1x1x32xf32> to vector<1x32xf32>
    %119 = vector.broadcast %118 : vector<1x32xf32> to vector<16x32xf32>
    %120 = arith.addf %116, %119 : vector<16x32xf32>
    %121 = arith.addf %102, %120 : vector<16x32xf32>
    %c0_63 = arith.constant 0 : index
    %c0_64 = arith.constant 0 : index
    %c0_65 = arith.constant 0 : index
    %122 = vector.load %arg15[%c0_63, %c0_64, %c0_65] : memref<1x1x32xf32, #tpu.memory_space<vmem>>, vector<1x1x32xf32>
    %123 = vector.shape_cast %122 : vector<1x1x32xf32> to vector<1x32xf32>
    %c0_66 = arith.constant 0 : index
    %c0_67 = arith.constant 0 : index
    %c0_68 = arith.constant 0 : index
    %124 = vector.load %arg16[%c0_66, %c0_67, %c0_68] : memref<1x1x32xf32, #tpu.memory_space<vmem>>, vector<1x1x32xf32>
    %125 = vector.shape_cast %124 : vector<1x1x32xf32> to vector<1x32xf32>
    %cst_69 = arith.constant dense<0.000000e+00> : vector<16xf32>
    %126 = vector.multi_reduction <add>, %121, %cst_69 [1] : vector<16x32xf32> to vector<16xf32>
    %127 = vector.shape_cast %126 : vector<16xf32> to vector<16x1xf32>
    %cst_70 = arith.constant 3.125000e-02 : f32
    %128 = vector.broadcast %cst_70 : f32 to vector<16x1xf32>
    %129 = arith.mulf %127, %128 : vector<16x1xf32>
    %130 = arith.mulf %121, %121 : vector<16x32xf32>
    %cst_71 = arith.constant dense<0.000000e+00> : vector<16xf32>
    %131 = vector.multi_reduction <add>, %130, %cst_71 [1] : vector<16x32xf32> to vector<16xf32>
    %132 = vector.shape_cast %131 : vector<16xf32> to vector<16x1xf32>
    %cst_72 = arith.constant 3.125000e-02 : f32
    %133 = vector.broadcast %cst_72 : f32 to vector<16x1xf32>
    %134 = arith.mulf %132, %133 : vector<16x1xf32>
    %135 = arith.mulf %129, %129 : vector<16x1xf32>
    %136 = arith.subf %134, %135 : vector<16x1xf32>
    %cst_73 = arith.constant 0.000000e+00 : f32
    %137 = vector.broadcast %cst_73 : f32 to vector<16x1xf32>
    %138 = arith.maximumf %136, %137 : vector<16x1xf32>
    %139 = vector.broadcast %129 : vector<16x1xf32> to vector<16x32xf32>
    %140 = arith.subf %121, %139 : vector<16x32xf32>
    %cst_74 = arith.constant 9.99999974E-6 : f32
    %141 = vector.broadcast %cst_74 : f32 to vector<16x1xf32>
    %142 = arith.addf %138, %141 : vector<16x1xf32>
    %143 = math.rsqrt %142 : vector<16x1xf32>
    %144 = vector.broadcast %143 : vector<16x1xf32> to vector<16x32xf32>
    %145 = arith.mulf %140, %144 : vector<16x32xf32>
    %146 = vector.broadcast %123 : vector<1x32xf32> to vector<16x32xf32>
    %147 = arith.mulf %145, %146 : vector<16x32xf32>
    %148 = vector.broadcast %125 : vector<1x32xf32> to vector<16x32xf32>
    %149 = arith.addf %147, %148 : vector<16x32xf32>
    %c0_75 = arith.constant 0 : index
    %c0_76 = arith.constant 0 : index
    %150 = vector.load %arg22[%c0_75, %c0_76] : memref<16x32xf32, #tpu.memory_space<vmem>>, vector<16x32xf32>
    tpu.vector_store %arg22[%c0_75, %c0_76], %149 {strides = array<i32>} : memref<16x32xf32, #tpu.memory_space<vmem>>, vector<16x32xf32>,
    %c1_i32 = arith.constant 1 : i32
    %151 = arith.cmpi eq, %arg1, %c1_i32 : i32
    %152 = arith.extui %151 : i1 to i32
    %c0_i32_77 = arith.constant 0 : i32
    %153 = arith.cmpi ne, %152, %c0_i32_77 : i32
    scf.if %153 {
      %c0_78 = arith.constant 0 : index
      %c0_79 = arith.constant 0 : index
      %154 = vector.load %arg17[%c0_78, %c0_79] : memref<32x128xbf16, #tpu.memory_space<vmem>>, vector<32x128xbf16>
      %155 = arith.truncf %149 : vector<16x32xf32> to vector<16x32xbf16>
      %cst_80 = arith.constant dense<0.000000e+00> : vector<16x128xf32>
      %156 = tpu.matmul %155, %154, %cst_80 {dimension_numbers = #tpu.dot_dimension_numbers<[1], [0], [0], [1], [0, 0, 1, 1], [], []>} : vector<16x32xbf16>, vector<32x128xbf16>, vector<16x128xf32> -> vector<16x128xf32>
      %c0_81 = arith.constant 0 : index
      %c0_82 = arith.constant 0 : index
      %157 = vector.load %arg18[%c0_81, %c0_82] : memref<1x128xf32, #tpu.memory_space<vmem>>, vector<1x128xf32>
      %158 = vector.broadcast %157 : vector<1x128xf32> to vector<16x128xf32>
      %159 = arith.addf %156, %158 : vector<16x128xf32>
      %cst_83 = arith.constant 0.000000e+00 : f32
      %160 = vector.broadcast %cst_83 : f32 to vector<16x128xf32>
      %161 = arith.maximumf %159, %160 : vector<16x128xf32>
      %c0_84 = arith.constant 0 : index
      %c0_85 = arith.constant 0 : index
      %162 = vector.load %arg19[%c0_84, %c0_85] : memref<128x128xbf16, #tpu.memory_space<vmem>>, vector<128x128xbf16>
      %163 = arith.truncf %161 : vector<16x128xf32> to vector<16x128xbf16>
      %cst_86 = arith.constant dense<0.000000e+00> : vector<16x128xf32>
      %164 = tpu.matmul %163, %162, %cst_86 {dimension_numbers = #tpu.dot_dimension_numbers<[1], [0], [0], [1], [0, 0, 1, 1], [], []>} : vector<16x128xbf16>, vector<128x128xbf16>, vector<16x128xf32> -> vector<16x128xf32>
      %c0_87 = arith.constant 0 : index
      %c0_88 = arith.constant 0 : index
      %165 = vector.load %arg20[%c0_87, %c0_88] : memref<1x128xf32, #tpu.memory_space<vmem>>, vector<1x128xf32>
      %166 = vector.broadcast %165 : vector<1x128xf32> to vector<16x128xf32>
      %167 = arith.addf %164, %166 : vector<16x128xf32>
      %cst_89 = arith.constant 0.000000e+00 : f32
      %168 = vector.broadcast %cst_89 : f32 to vector<16x128xf32>
      %169 = arith.subf %168, %167 : vector<16x128xf32>
      %170 = math.exp %169 : vector<16x128xf32>
      %cst_90 = arith.constant 1.000000e+00 : f32
      %171 = vector.broadcast %cst_90 : f32 to vector<16x128xf32>
      %172 = arith.addf %171, %170 : vector<16x128xf32>
      %cst_91 = arith.constant 1.000000e+00 : f32
      %173 = vector.broadcast %cst_91 : f32 to vector<16x128xf32>
      %174 = arith.divf %173, %172 : vector<16x128xf32>
      %175 = vector.shape_cast %174 : vector<16x128xf32> to vector<2x8x128xf32>
      %c0_92 = arith.constant 0 : index
      %c0_93 = arith.constant 0 : index
      %c0_94 = arith.constant 0 : index
      %176 = vector.load %arg21[%c0_92, %c0_93, %c0_94] : memref<2x8x128xf32, #tpu.memory_space<vmem>>, vector<2x8x128xf32>
      tpu.vector_store %arg21[%c0_92, %c0_93, %c0_94], %175 {strides = array<i32>} : memref<2x8x128xf32, #tpu.memory_space<vmem>>, vector<2x8x128xf32>,
    } else {
    }
    return
  }
  func.func @transform_0(%arg0: i32, %arg1: i32) -> (i32, i32, i32) {
    %c0_i32 = arith.constant 0 : i32
    %c0_i32_0 = arith.constant 0 : i32
    %c0_i32_1 = arith.constant 0 : i32
    return %arg0, %c0_i32, %c0_i32_0 : i32, i32, i32
  }
  func.func @transform_1(%arg0: i32, %arg1: i32) -> (i32, i32) {
    %c0_i32 = arith.constant 0 : i32
    %c0_i32_0 = arith.constant 0 : i32
    %c0_i32_1 = arith.constant 0 : i32
    return %c0_i32, %c0_i32_0 : i32, i32
  }
  func.func @transform_2(%arg0: i32, %arg1: i32) -> (i32, i32) {
    %c0_i32 = arith.constant 0 : i32
    %c0_i32_0 = arith.constant 0 : i32
    %c0_i32_1 = arith.constant 0 : i32
    return %c0_i32, %c0_i32_0 : i32, i32
  }
  func.func @transform_3(%arg0: i32, %arg1: i32) -> (i32, i32, i32) {
    %c0_i32 = arith.constant 0 : i32
    %c0_i32_0 = arith.constant 0 : i32
    %c0_i32_1 = arith.constant 0 : i32
    return %arg1, %c0_i32, %c0_i32_0 : i32, i32, i32
  }
  func.func @transform_4(%arg0: i32, %arg1: i32) -> (i32, i32, i32) {
    %c0_i32 = arith.constant 0 : i32
    %c0_i32_0 = arith.constant 0 : i32
    %c0_i32_1 = arith.constant 0 : i32
    return %arg1, %c0_i32, %c0_i32_0 : i32, i32, i32
  }
  func.func @transform_5(%arg0: i32, %arg1: i32) -> (i32, i32, i32) {
    %c0_i32 = arith.constant 0 : i32
    %c0_i32_0 = arith.constant 0 : i32
    %c0_i32_1 = arith.constant 0 : i32
    return %arg1, %c0_i32, %c0_i32_0 : i32, i32, i32
  }
  func.func @transform_6(%arg0: i32, %arg1: i32) -> (i32, i32, i32) {
    %c0_i32 = arith.constant 0 : i32
    %c0_i32_0 = arith.constant 0 : i32
    %c0_i32_1 = arith.constant 0 : i32
    return %arg1, %c0_i32, %c0_i32_0 : i32, i32, i32
  }
  func.func @transform_7(%arg0: i32, %arg1: i32) -> (i32, i32, i32) {
    %c0_i32 = arith.constant 0 : i32
    %c0_i32_0 = arith.constant 0 : i32
    %c0_i32_1 = arith.constant 0 : i32
    return %arg1, %c0_i32, %c0_i32_0 : i32, i32, i32
  }
  func.func @transform_8(%arg0: i32, %arg1: i32) -> (i32, i32, i32) {
    %c0_i32 = arith.constant 0 : i32
    %c0_i32_0 = arith.constant 0 : i32
    %c0_i32_1 = arith.constant 0 : i32
    return %arg1, %c0_i32, %c0_i32_0 : i32, i32, i32
  }
  func.func @transform_9(%arg0: i32, %arg1: i32) -> (i32, i32, i32) {
    %c0_i32 = arith.constant 0 : i32
    %c0_i32_0 = arith.constant 0 : i32
    %c0_i32_1 = arith.constant 0 : i32
    return %arg1, %c0_i32, %c0_i32_0 : i32, i32, i32
  }
  func.func @transform_10(%arg0: i32, %arg1: i32) -> (i32, i32, i32) {
    %c0_i32 = arith.constant 0 : i32
    %c0_i32_0 = arith.constant 0 : i32
    %c0_i32_1 = arith.constant 0 : i32
    return %arg1, %c0_i32, %c0_i32_0 : i32, i32, i32
  }
  func.func @transform_11(%arg0: i32, %arg1: i32) -> (i32, i32, i32) {
    %c0_i32 = arith.constant 0 : i32
    %c0_i32_0 = arith.constant 0 : i32
    %c0_i32_1 = arith.constant 0 : i32
    return %arg1, %c0_i32, %c0_i32_0 : i32, i32, i32
  }
  func.func @transform_12(%arg0: i32, %arg1: i32) -> (i32, i32, i32) {
    %c0_i32 = arith.constant 0 : i32
    %c0_i32_0 = arith.constant 0 : i32
    %c0_i32_1 = arith.constant 0 : i32
    return %arg1, %c0_i32, %c0_i32_0 : i32, i32, i32
  }
  func.func @transform_13(%arg0: i32, %arg1: i32) -> (i32, i32, i32) {
    %c0_i32 = arith.constant 0 : i32
    %c0_i32_0 = arith.constant 0 : i32
    %c0_i32_1 = arith.constant 0 : i32
    return %arg1, %c0_i32, %c0_i32_0 : i32, i32, i32
  }
  func.func @transform_14(%arg0: i32, %arg1: i32) -> (i32, i32, i32) {
    %c0_i32 = arith.constant 0 : i32
    %c0_i32_0 = arith.constant 0 : i32
    %c0_i32_1 = arith.constant 0 : i32
    return %arg1, %c0_i32, %c0_i32_0 : i32, i32, i32
  }
  func.func @transform_15(%arg0: i32, %arg1: i32) -> (i32, i32) {
    %c0_i32 = arith.constant 0 : i32
    %c0_i32_0 = arith.constant 0 : i32
    %c0_i32_1 = arith.constant 0 : i32
    return %c0_i32, %c0_i32_0 : i32, i32
  }
  func.func @transform_16(%arg0: i32, %arg1: i32) -> (i32, i32) {
    %c0_i32 = arith.constant 0 : i32
    %c0_i32_0 = arith.constant 0 : i32
    %c0_i32_1 = arith.constant 0 : i32
    return %c0_i32, %c0_i32_0 : i32, i32
  }
  func.func @transform_17(%arg0: i32, %arg1: i32) -> (i32, i32) {
    %c0_i32 = arith.constant 0 : i32
    %c0_i32_0 = arith.constant 0 : i32
    %c0_i32_1 = arith.constant 0 : i32
    return %c0_i32, %c0_i32_0 : i32, i32
  }
  func.func @transform_18(%arg0: i32, %arg1: i32) -> (i32, i32) {
    %c0_i32 = arith.constant 0 : i32
    %c0_i32_0 = arith.constant 0 : i32
    %c0_i32_1 = arith.constant 0 : i32
    return %c0_i32, %c0_i32_0 : i32, i32
  }
  func.func @transform_19(%arg0: i32, %arg1: i32) -> (i32, i32, i32) {
    %c0_i32 = arith.constant 0 : i32
    %c0_i32_0 = arith.constant 0 : i32
    %c0_i32_1 = arith.constant 0 : i32
    return %arg0, %c0_i32, %c0_i32_0 : i32, i32, i32
  }
}

</mosaic_0001>

<bundles_post_ra>
// kernel: tpu_custom_call.1
= control target key start
LH: loop header
LB: loop body
LE: loop exit
PB: predicated region body
PF: predicated region fallthrough
CT: control target
= control target key end

     0   :  { %s5594_s0 = inlined_call_operand.vmem [shape: f32[2,8,8], index: 0, kind: input, shape index: {}]   ;;  %s5595_s1 = inlined_call_operand.vmem [shape: bf16[8,32], index: 1, kind: input, shape index: {}]   ;;  %s5596_s2 = inlined_call_operand.vmem [shape: f32[1,32], index: 2, kind: input, shape index: {}]   ;;  %s5597_s3 = inlined_call_operand.vmem [shape: bf16[2,32,96], index: 3, kind: input, shape index: {}]   ;;  %s5598_s4 = inlined_call_operand.vmem [shape: f32[2,1,96], index: 4, kind: input, shape index: {}]   ;;  %s5599_s5 = inlined_call_operand.vmem [shape: bf16[2,32,32], index: 5, kind: input, shape index: {}]   ;;  %s5600_s6 = inlined_call_operand.vmem [shape: f32[2,1,32], index: 6, kind: input, shape index: {}]   ;;  %s5601_s7 = inlined_call_operand.vmem [shape: f32[2,1,32], index: 7, kind: input, shape index: {}]   ;;  %s5602_s8 = inlined_call_operand.vmem [shape: f32[2,1,32], index: 8, kind: input, shape index: {}]   ;;  %s5603_s9 = inlined_call_operand.vmem [shape: bf16[2,32,2048], index: 9, kind: input, shape index: {}]   ;;  %s5604_s10 = inlined_call_operand.vmem [shape: f32[2,1,2048], index: 10, kind: input, shape index: {}]   ;;  %s5605_s11 = inlined_call_operand.vmem [shape: bf16[2,2048,32], index: 11, kind: input, shape index: {}]   ;;  %s5606_s12 = inlined_call_operand.vmem [shape: f32[2,1,32], index: 12, kind: input, shape index: {}]   ;;  %s5607_s13 = inlined_call_operand.vmem [shape: f32[2,1,32], index: 13, kind: input, shape index: {}]   ;;  %s5608_s14 = inlined_call_operand.vmem [shape: f32[2,1,32], index: 14, kind: input, shape index: {}]   ;;  %s5609_s15 = inlined_call_operand.vmem [shape: bf16[32,128], index: 15, kind: input, shape index: {}]   ;;  %s5610_s16 = inlined_call_operand.vmem [shape: f32[1,128], index: 16, kind: input, shape index: {}]   ;;  %s5611_s17 = inlined_call_operand.vmem [shape: bf16[128,128], index: 17, kind: input, shape index: {}]   ;;  %s5612_s18 = inlined_call_operand.vmem [shape: f32[1,128], index: 18, kind: input, shape index: {}]   ;;  %s5613_s19 = inlined_call_operand.hbm [shape: f32[2,8,128], index: 19, kind: output, shape index: {}]  }
   0x1   :  { %5620 = sst [smem:[#allocation11_spill]] %s5594_s0 }
   0x2   :  { %5621 = sst [smem:[#allocation12_spill]] %s5595_s1 }
   0x3   :  { %5622 = sst [smem:[#allocation13_spill]] %s5596_s2 }
   0x4   :  { %5623 = sst [smem:[#allocation14_spill]] %s5597_s3 }
   0x5   :  { %5624 = sst [smem:[#allocation15_spill]] %s5599_s5 }
   0x6   :  { %5625 = sst [smem:[#allocation16_spill]] %s5609_s15 }
   0x7   :  { %5626 = sst [smem:[#allocation17_spill]] %s5610_s16 }
   0x8   :  { %5627 = sst [smem:[#allocation18_spill]] %s5611_s17 }
   0x9   :  { %5628 = sst [smem:[#allocation19_spill]] %s5612_s18 }
   0xa   :  { %5629 = sst [smem:[#allocation20_spill]] %s5613_s19 }
   0xb   :  { %24 = vsyncpa [#allocation6], 0  ;;  %s4979_s0 = smov 0   ;;  %s4981_s30 = smov 0  }
   0xc   :  { %s4983_s20 = smov 0  }
   0xd LB: > { %5630 = sst [smem:[#allocation8_spill]] %s4856_s30  ;;  %s39_s1 = sadd.s32 1, %s4856_s30  ;;  %s4860_s20 = sphi %s4983_s20, %s30_s20   ;;  %s4856_s30 = sphi %s4981_s30, %s5652_s30   ;;  %s4852_s0 = sphi %s4979_s0, %s5651_s0  }
   0xe   : > { %5631 = sst [smem:[#allocation9_spill]] %s4860_s20  ;;  %p40_p0 = scmp.ge.s32.totalorder %s39_s1, 2 }
   0xf   : > { %p4050_p1 = scmp.ge.s32.totalorder %s4860_s20, 1  ;;  %p656_p2 = scmp.lt.s32.totalorder %s4860_s20, 3 }
  0x10   : > { %s5654_s1 = smov (%p40_p0, %s39_s1), 0 }
  0x11   : > { %5632 = sst [smem:[#allocation10_spill]] %s5654_s1  ;;  %p657_p3 = pnand %p4050_p1, %p656_p2 }
  0x12   : > { %p758_p4 = scmp.lt.s32.totalorder (!%p657_p3), %s4852_s0, 1  ;;  %s5633_s27 = sld [smem:[#allocation14_spill]] (!%p657_p3) }
  0x13   : > { %660 = sbr.rel (%p657_p3) target bundleno = 3318 (0xcf6), region = 96  ;;  %s5634_s5 = sld [smem:[#allocation15_spill]] (!%p657_p3) }
  0x14   : > { %p4060_p5 = scmp.ne.s32.totalorder (!%p657_p3), %s4852_s0, 0 }
  0x1a   : > { %s5002_s22 = scalar_select %p758_p4, %s4852_s0, 1 }
  0x1b   : > { %808 = sbr.rel (%p4060_p5) target bundleno = 259 (0x103), region = 100  ;;  %s5635_s20 = sld [smem:[#allocation12_spill]] (!%p4060_p5)  ;;  %vm851_vm0 = vcmask (!%p4060_p5), 1043456   ;;  %v4862_v2 = vmov (!%p4060_p5), 0.0   ;;  %vm4863_vm1 = vmmov (!%p4060_p5), 0   ;;  %vm847_vm3 = vcmask (!%p4060_p5), 64512  }
  0x1c   : > { %s4272_s2 = sshll.u32 %s5002_s22, 4  ;;  %s4274_s3 = sshll.u32 %s5002_s22, 8  ;;  %4488 = vmatprep.subr.bf16.mxu0 (!%p4060_p5), %v4862_v2  ;;  %4490 = vmatprep.mubr.msk.bf16.mxu0 (!%p4060_p5), %vm4863_vm1, %v4862_v2  ;;  %v4864_v6 = vmov (!%p4060_p5), 0   ;;  %v823_v9 = vlaneseq (!%p4060_p5)  ;;  %vm835_vm5 = vcmask (!%p4060_p5), 57344   ;;  %vm896_vm6 = vcmask (!%p4060_p5), 261120  }
  0x1d   : > { %s5012_s28 = scalar_lea.vmem %s5633_s27, %s4272_s2  ;;  %s5017_s1 = scalar_lea.vmem %s5634_s5, %s4272_s2  ;;  %4633 = vset.pattern.permute.xlu0 (!%p4060_p5), %v4864_v6 }
  0x1e   : > { %s5035_s15 = scalar_lea.vmem %s5603_s9, %s4274_s3  ;;  %s5040_s5 = scalar_lea.vmem %s5604_s10, %s4272_s2  ;;  %v824_v10 = vand.u32 (!%p4060_p5), 127, %v823_v9  ;;  %v826_v11 = vshrl.u32 (!%p4060_p5), %v823_v9, 7 }
  0x1f   : > { %s4275_s19 = sshll.u32 %s5002_s22, 10  ;;  %s796_s16 = scalar_lea.vmem %s5606_s12, %s5002_s22 }
  0x20   : > { %s5050_s23 = scalar_lea.vmem %s5605_s11, %s4275_s19  ;;  %s799_s3 = scalar_lea.vmem %s5607_s13, %s5002_s22  ;;  %v827_v12 = vsub.s32 (!%p4060_p5), %v824_v10, %v826_v11 }
  0x21   : > { %s802_s21 = scalar_lea.vmem %s5608_s14, %s5002_s22  ;;  %v838_v0 = vld [vmem:[%s5635_s20] sm:$0xf] (!%p4060_p5)  ;;  %s5636_s19 = sld [smem:[#allocation11_spill]] (!%p4060_p5) }
  0x22   : > { %v853_v3 = vsel %vm851_vm0, %v838_v0, 0  ;;  %s5637_s27 = sld [smem:[#allocation13_spill]] }
  0x23   : > { %4489 = vmatpush3.bf16.msra.mxu0 %v853_v3 }
  0x27   : > { %v809_v1 = vld [vmem:[%s5636_s19] sm:$0xff]  ;;  %v810_v4 = vld [vmem:[%s5636_s19 + $0x8] sm:$0xff] }
  0x28   : > { %vm811_vm2 = vcmp.eq.f32.partialorder %v809_v1, -1.0  ;;  %v839_v5 = vpack.c.bf16 %v810_v4, %v809_v1  ;;  %vm812_vm4 = vcmp.eq.f32.partialorder %v810_v4, -1.0  ;;  %v4061_v17 = vld [vmem:[%s5637_s27] ss:$0 sm:$0xff] }
  0x29   : > { %v813_v7 = vsel %vm811_vm2, -1e+30, %v4862_v2  ;;  %v814_v8 = vsel %vm812_vm4, -1e+30, %v4862_v2 }
  0x2a   : > { %818 = vperm.xlu0 %4633, %v813_v7   ;;  %4491 = vmatmul.mubr.msk.bf16.vlgmr.msra.gmra.mrb[0].mxu0 %vm847_vm3, %v839_v5 }
  0x2e   : > { %821 = vperm.xlu0 %4633, %v814_v8  }
  0xa9   : > { %v819_v13 = vpop.permute.xlu0 %818 }
  0xaa   : > { %v828_v14 = vrot.slane %v819_v13, %v827_v12 }
  0xac   : > { %836 = vst.msk [vmem:[#allocation3] sm:$0x1] %vm835_vm5, %v828_v14 }
  0xad   : > { %v822_v15 = vpop.permute.xlu0 %821 }
  0xae   : > { %v832_v16 = vrot.slane %v822_v15, %v827_v12 }
  0xb0   : > { %837 = vst.msk [vmem:[#allocation3 + $0x1] sm:$0x1] %vm835_vm5, %v832_v16 }
  0xfd   : > { %v889_v18 = vpop.f32.mrb[0].mxu0 }
  0xfe   : > { %v890_v19 = vadd.f32 %v4061_v17, %v889_v18  ;;  %v4492_v20 = vpop.f32.mrb[1].mxu0 }
  0xff   : > { %v892_v21 = vpop.f32.mrb[2].mxu0 }
 0x100   : > { %897 = vst.msk [vmem:[#allocation2] sm:$0xff] %vm896_vm6, %v890_v19  ;;  %v893_v22 = vadd.f32 %v4061_v17, %v892_v21  ;;  %v4493_v23 = vpop.f32.mrb[3].mxu0 }
 0x102   : > { %898 = vst.msk [vmem:[#allocation2 + $0x8] sm:$0xff] %vm896_vm6, %v893_v22 }
 0x103 PF: > { %v4634_v24 = vld [vmem:[%s5012_s28] sm:$0xff]   ;;  %v4865_v25 = vmov 0.0   ;;  %v4635_v26 = vld [vmem:[%s5012_s28 + $0x8] sm:$0xff]   ;;  %vm4866_vm7 = vmmov 0   ;;  %vm927_vm8 = vcmask 261120   ;;  %s5638_s29 = scalar_lea.vmem %s5598_s4, %s5002_s22  ;;  %s4867_s20 = smov 96   ;;  %v974_v45 = vlaneseq }
 0x104   : > { %4494 = vmatprep.subr.bf16.mxu0 %v4865_v25  ;;  %4502 = vmatprep.subr.bf16.mxu1 %v4865_v25  ;;  %v4063_v30 = vld [vmem:[%s5638_s29] ss:$0 sm:$0xff]  ;;  %s4868_s30 = smov 64   ;;  %s4869_s17 = smov 80   ;;  %vm995_vm9 = vcmask 130048   ;;  %vm1119_vm10 = vcmask 1043456  }
 0x105   : > { %4495 = vmatpush3.bf16.msra.mxu0 %v4634_v24  ;;  %4498 = vmatprep.mubr.msk.bf16.mxu0 %vm4866_vm7, %v4865_v25  ;;  %s4870_s25 = smov 112   ;;  %v5123_v46 = vshrl.u32 %v974_v45, 7  ;;  %v977_v47 = vand.u32 127, %v974_v45  ;;  %v5126_v48 = vld [vmem:[#allocation3] ss:$0 sm:$0xff]  ;;  %vm1093_vm12 = vcmask 64512   ;;  %s5639_s27 = scalar_lea.vmem %s5600_s6, %s5002_s22 }
 0x106   : > { %4496 = vmatprep.subr.bf16.mxu0 %v4865_v25  ;;  %4504 = vmatprep.mubr.msk.bf16.mxu1 %vm4866_vm7, %v4865_v25  ;;  %v5132_v54 = vld [vmem:[#allocation3 + $0x1] ss:$0 sm:$0xff]  ;;  %s4871_s18 = smov 48   ;;  %s4872_s24 = smov 16   ;;  %vm1447_vm13 = vcmask 261248  }
 0x107   : > { %v5079_v27 = vld [vmem:[#allocation2] sm:$0xff]  ;;  %vm978_vm11 = vcmp.gt.s32.totalorder %v977_v47, %v5123_v46  ;;  %s5640_s29 = scalar_lea.vmem %s5601_s7, %s5002_s22  ;;  %p4254_p6 = scmp.ne.s32.totalorder %s4852_s0, 1 }
 0x108   : > { %v5129_v50 = vsel %vm978_vm11, -1e+30, %v4865_v25  ;;  %vm4875_vm14 = vmmov (!%p4254_p6), 0   ;;  %s5643_s28 = sld [smem:[#allocation18_spill]] (!%p4254_p6)  ;;  %s5644_s26 = sld [smem:[#allocation17_spill]] (!%p4254_p6) }
 0x109   : > { %v5081_v28 = vld [vmem:[#allocation2 + $0x8] sm:$0xff]  ;;  %4497 = vmatpush3.bf16.msra.mxu0 %v4635_v26  ;;  %s5645_s2 = sld [smem:[#allocation19_spill]] (!%p4254_p6) }
 0x10a   : > { %v907_v29 = vpack.c.bf16 %v5081_v28, %v5079_v27  ;;  %4508 = vmatprep.subr.bf16.mxu0 %v4865_v25 }
 0x10c   : > { %4499 = vmatmul.mubr.msk.bf16.vlgmr.msra.gmra.mrb[0].mxu0 %vm927_vm8, %v907_v29 }
 0x10d   : > { %4510 = vmatprep.mubr.msk.bf16.mxu0 %vm4866_vm7, %v4865_v25 }
 0x1df   : > { %v965_v31 = vpop.f32.mrb[0].mxu0 }
 0x1e0   : > { %v966_v32 = vadd.f32 %v4063_v30, %v965_v31  ;;  %v4500_v33 = vpop.f32.mrb[1].mxu0 }
 0x1e1   : > { %v968_v34 = vpop.f32.mrb[2].mxu0 }
 0x1e2   : > { %v5097_v35 = vpack.c.bf16 %v966_v32, %v966_v32  ;;  %v969_v36 = vadd.f32 %v4063_v30, %v968_v34  ;;  %v4501_v37 = vpop.f32.mrb[3].mxu0 }
 0x1e4   : > { %993 = vrot.lane.b32.xlu0 %v5097_v35, %s4867_s20  ;;  %v5100_v38 = vpack.c.bf16 %v969_v36, %v969_v36 }
 0x1e8   : > { %1043 = vrot.lane.b32.xlu0 %v5100_v38, %s4867_s20 }
 0x1ec   : > { %1114 = vrot.lane.b32.xlu0 %v5097_v35, %s4868_s30 }
 0x1f0   : > { %1219 = vrot.lane.b32.xlu0 %v5097_v35, %s4869_s17 }
 0x1f4   : > { %1269 = vrot.lane.b32.xlu0 %v5100_v38, %s4869_s17  ;;  %s5641_s17 = scalar_lea.vmem %s5602_s8, %s5002_s22 }
 0x1f8   : > { %1217 = vrot.lane.b32.xlu0 %v5097_v35, %s4870_s25 }
 0x1fc   : > { %1267 = vrot.lane.b32.xlu0 %v5100_v38, %s4870_s25 }
 0x256   : > { %v994_v39 = vpop.permute.xlu0 %993 }
 0x257   : > { %v1000_v40 = vsel %vm995_vm9, %v994_v39, 0 }
 0x258   : > { %4503 = vmatpush3.bf16.xpose.msra.mxu1 %v1000_v40 }
 0x259   : > { %4514 = vmatprep.subr.bf16.mxu1 %v4865_v25 }
 0x25a   : > { %v1044_v41 = vpop.permute.xlu0 %1043 }
 0x25b   : > { %v1049_v42 = vsel %vm995_vm9, %v1044_v41, 0 }
 0x25c   : > { %4509 = vmatpush3.bf16.xpose.msra.mxu0 %v1049_v42 }
 0x25d   : > { %4520 = vmatprep.subr.bf16.mxu0 %v4865_v25 }
 0x25e   : > { %v1115_v43 = vpop.permute.xlu0 %1114 }
 0x25f   : > { %v1121_v44 = vsel %vm1119_vm10, %v1115_v43, 0  ;;  %4505 = vmatmul.mubr.msk.bf16.vlgmr.msra.gmra.mrb[0].mxu1 %vm995_vm9, %v5097_v35 }
 0x260   : > { %4515 = vmatpush3.bf16.msra.mxu1 %v1121_v44  ;;  %4516 = vmatprep.mubr.msk.bf16.mxu1 %vm4866_vm7, %v4865_v25 }
 0x261   : > { %4526 = vmatprep.subr.bf16.mxu1 %v4865_v25 }
 0x262   : > { %v1220_v9 = vpop.permute.xlu0 %1219 }
 0x263   : > { %4511 = vmatmul.mubr.msk.bf16.vlgmr.msra.gmra.mrb[4].mxu0 %vm995_vm9, %v5100_v38  ;;  %v1225_v13 = vsel %vm995_vm9, %v1220_v9, 0 }
 0x264   : > { %4522 = vmatprep.mubr.msk.bf16.mxu0 %vm4866_vm7, %v4865_v25 }
 0x266   : > { %v1270_v12 = vpop.permute.xlu0 %1269 }
 0x267   : > { %v1275_v16 = vsel %vm995_vm9, %v1270_v12, 0 }
 0x26a   : > { %v1218_v17 = vpop.permute.xlu0 %1217 }
 0x26e   : > { %v1268_v18 = vpop.permute.xlu0 %1267 }
 0x332   : > { %v1036_v49 = vpop.f32.mrb[0].mxu1 }
 0x333   : > { %v1037_v51 = vadd.f32 %v5126_v48, %v1036_v49  ;;  %v4506_v52 = vpop.f32.mrb[1].mxu1 }
 0x334   : > { %v1039_v53 = vpop.f32.mrb[2].mxu1 }
 0x335   : > { %v4507_v55 = vpop.f32.mrb[3].mxu1  ;;  %v1091_v56 = vadd.f32 %v1037_v51, %v5129_v50 }
 0x336   : > { %v1085_v57 = vpop.f32.mrb[4].mxu0 }
 0x337   : > { %v1086_v58 = vadd.f32 %v5132_v54, %v1085_v57  ;;  %v4512_v59 = vpop.f32.mrb[5].mxu0  ;;  %v1094_v60 = vsel %vm1093_vm12, %v1091_v56, -inf }
 0x338   : > { %1095 = vmax.xlane.f32.xlu1 %v1094_v60  ;;  %v1088_v61 = vpop.f32.mrb[6].mxu0 }
 0x339   : > { %v4513_v62 = vpop.f32.mrb[7].mxu0  ;;  %v1092_v63 = vadd.f32 %v1086_v58, %v5129_v50 }
 0x33b   : > { %v1097_v0 = vsel %vm1093_vm12, %v1092_v63, -inf }
 0x33c   : > { %1098 = vmax.xlane.f32.xlu1 %v1097_v0 }
 0x34d   : > { %1163 = vrot.lane.b32.xlu1 %v5100_v38, %s4868_s30 }
 0x3c5   : > { %v1096_v1 = vpop.xlane.xlu1 %1095 }
 0x3c6   : > { %v1100_v2 = vsub.f32 %v1091_v56, %v1096_v1 }
 0x3c8   : > { %v1102_v3 = vmul.f32 1.442695, %v1100_v2 }
 0x3c9   : > { %v1099_v4 = vpop.xlane.xlu1 %1098 }
 0x3ca   : > { %4766 = vpow2.f32 %v1102_v3  ;;  %v1101_v5 = vsub.f32 %v1092_v63, %v1099_v4 }
 0x3cc   : > { %v1104_v6 = vmul.f32 1.442695, %v1101_v5 }
 0x3cd   : > { %v1164_v7 = vpop.permute.xlu1 %1163 }
 0x3ce   : > { %4768 = vpow2.f32 %v1104_v6  ;;  %v1169_v8 = vsel %vm1119_vm10, %v1164_v7, 0  ;;  %v4636_v7 = vld [vmem:[%s5017_s1] sm:$0xff]  }
 0x3cf   : > { %4521 = vmatpush3.bf16.msra.mxu0 %v1169_v8  ;;  %v4637_v8 = vld [vmem:[%s5017_s1 + $0x8] sm:$0xff]   ;;  %s5642_s1 = sld [smem:[#allocation16_spill]] (!%p4254_p6) }
 0x3d0   : > { %4532 = vmatprep.subr.bf16.mxu0 %v4865_v25 }
 0x3d4   : > { %v5143_v10 = vpop.eup %4766 }
 0x3d5   : > { %v1112_v11 = vpack.c.bf16 %v5143_v10, %v5143_v10  ;;  %v1106_v62 = vsel %vm1093_vm12, %v5143_v10, 0.0 }
 0x3d7   : > { %4517 = vmatmul.mubr.msk.bf16.vlgmr.msra.gmra.mrb[4].mxu1 %vm1093_vm12, %v1112_v11 }
 0x3d8   : > { %v5149_v14 = vpop.eup %4768  ;;  %4527 = vmatpush3.bf16.xpose.msra.mxu1 %v1225_v13  ;;  %4528 = vmatprep.mubr.msk.bf16.mxu1 %vm4866_vm7, %v4865_v25 }
 0x3d9   : > { %v1113_v15 = vpack.c.bf16 %v5149_v14, %v5149_v14  ;;  %4538 = vmatprep.subr.bf16.mxu1 %v4865_v25  ;;  %v1109_v59 = vsel %vm1093_vm12, %v5149_v14, 0.0 }
 0x3db   : > { %4523 = vmatmul.mubr.msk.bf16.vlgmr.msra.gmra.mrb[8].mxu0 %vm1093_vm12, %v1113_v15 }
 0x3dc   : > { %4533 = vmatpush3.bf16.xpose.msra.mxu0 %v1275_v16  ;;  %4534 = vmatprep.mubr.msk.bf16.mxu0 %vm4866_vm7, %v4865_v25 }
 0x3dd   : > { %4544 = vmatprep.subr.bf16.mxu0 %v4865_v25 }
 0x3df   : > { %4529 = vmatmul.mubr.msk.bf16.vlgmr.msra.gmra.mrb[8].mxu1 %vm995_vm9, %v1218_v17 }
 0x3e0   : > { %4540 = vmatprep.mubr.msk.bf16.mxu1 %vm4866_vm7, %v4865_v25 }
 0x3e3   : > { %4535 = vmatmul.mubr.msk.bf16.vlgmr.msra.gmra.mrb[12].mxu0 %vm995_vm9, %v1268_v18 }
 0x3e4   : > { %4546 = vmatprep.mubr.msk.bf16.mxu0 %vm4866_vm7, %v4865_v25 }
 0x4aa   : > { %v5167_v19 = vpop.f32.mrb[4].mxu1 }
 0x4ab   : > { %v4518_v20 = vpop.f32.mrb[5].mxu1 }
 0x4ac   : > { %v1160_v21 = vpop.f32.mrb[6].mxu1 }
 0x4ad   : > { %v4519_v22 = vpop.f32.mrb[7].mxu1 }
 0x4ae   : > { %v1205_v23 = vpop.f32.mrb[8].mxu0 }
 0x4af   : > { %v4524_v24 = vpop.f32.mrb[9].mxu0 }
 0x4b0   : > { %v1208_v26 = vpop.f32.mrb[10].mxu0 }
 0x4b1   : > { %v4525_v29 = vpop.f32.mrb[11].mxu0  ;;  %v4077_v26 = vld [vmem:[%s5639_s27] ss:$0 sm:$0xff] }
 0x4b2   : > { %v1261_v30 = vpop.f32.mrb[8].mxu1 }
 0x4b3   : > { %v1262_v31 = vadd.f32 %v5126_v48, %v1261_v30  ;;  %v4530_v32 = vpop.f32.mrb[9].mxu1 }
 0x4b4   : > { %v1264_v33 = vpop.f32.mrb[10].mxu1 }
 0x4b5   : > { %v4531_v34 = vpop.f32.mrb[11].mxu1  ;;  %v1317_v36 = vadd.f32 %v1262_v31, %v5129_v50 }
 0x4b6   : > { %v1311_v37 = vpop.f32.mrb[12].mxu0 }
 0x4b7   : > { %v1312_v39 = vadd.f32 %v5132_v54, %v1311_v37  ;;  %v4536_v40 = vpop.f32.mrb[13].mxu0  ;;  %v1319_v41 = vsel %vm1093_vm12, %v1317_v36, -inf }
 0x4b8   : > { %1320 = vmax.xlane.f32.xlu1 %v1319_v41  ;;  %v1314_v42 = vpop.f32.mrb[14].mxu0 }
 0x4b9   : > { %v4537_v43 = vpop.f32.mrb[15].mxu0  ;;  %v1318_v44 = vadd.f32 %v1312_v39, %v5129_v50 }
 0x4ba   : > { %v1572_v43 = vld [vmem:[%s5035_s15] sm:$0xff] }
 0x4bb   : > { %v1322_v45 = vsel %vm1093_vm12, %v1318_v44, -inf }
 0x4bc   : > { %1323 = vmax.xlane.f32.xlu0 %v1322_v45  ;;  %v1573_v45 = vld [vmem:[%s5035_s15 + $0x8] sm:$0xff] }
 0x4c9   : > { %1387 = vrot.lane.b32.xlu1 %v5100_v38, %s4871_s18 }
 0x4d2   : > { %1339 = vrot.lane.b32.xlu0 %v5097_v35, %s4871_s18 }
 0x545   : > { %v1321_v47 = vpop.xlane.xlu1 %1320 }
 0x546   : > { %v1325_v48 = vsub.f32 %v1317_v36, %v1321_v47 }
 0x548   : > { %v1327_v49 = vmul.f32 1.442695, %v1325_v48  ;;  %v1581_v48 = vld [vmem:[%s5035_s15 + $0x48] sm:$0xff] }
 0x549   : > { %v1388_v51 = vpop.permute.xlu1 %1387  ;;  %v1324_v52 = vpop.xlane.xlu0 %1323 }
 0x54a   : > { %4770 = vpow2.f32 %v1327_v49  ;;  %v1393_v53 = vsel %vm1119_vm10, %v1388_v51, 0  ;;  %v1326_v54 = vsub.f32 %v1318_v44, %v1324_v52  ;;  %v1580_v44 = vld [vmem:[%s5035_s15 + $0x40] sm:$0xff]  ;;  %v4085_v51 = vcombine.low %v1573_v45, %v1581_v48 }
 0x54b   : > { %4545 = vmatpush3.bf16.msra.mxu0 %v1393_v53  ;;  %v4084_v47 = vcombine.high %v1572_v43, %v1580_v44  ;;  %v4083_v49 = vcombine.low %v1572_v43, %v1580_v44  ;;  %v4086_v52 = vcombine.high %v1573_v45, %v1581_v48  ;;  %v1588_v53 = vld [vmem:[%s5035_s15 + $0x80] sm:$0xff]  ;;  %v1585_v43 = vld [vmem:[%s5035_s15 + $0x68] sm:$0xff] }
 0x54c   : > { %v1329_v55 = vmul.f32 1.442695, %v1326_v54  ;;  %v1596_v54 = vld [vmem:[%s5035_s15 + $0xc0] sm:$0xff] }
 0x54d   : > { %v1340_v50 = vpop.permute.xlu0 %1339  ;;  %1852 = vmatprep.subr.bf16.mxu0 %v4084_v47 }
 0x54e   : > { %4772 = vpow2.f32 %v1329_v55  ;;  %v1345_v56 = vsel %vm1119_vm10, %v1340_v50, 0  ;;  %v1589_v55 = vld [vmem:[%s5035_s15 + $0x88] sm:$0xff]  ;;  %v4100_v50 = vcombine.high %v1588_v53, %v1596_v54 }
 0x54f   : > { %4539 = vmatpush3.bf16.msra.mxu1 %v1345_v56  ;;  %v1597_v56 = vld [vmem:[%s5035_s15 + $0xc8] sm:$0xff] }
 0x550   : > { %4550 = vmatprep.subr.bf16.mxu1 %v4865_v25 }
 0x554   : > { %v4771_v38 = vpop.eup %4770 }
 0x555   : > { %v1331_v35 = vsel %vm1093_vm12, %v4771_v38, 0.0  ;;  %v1337_v57 = vpack.c.bf16 %v4771_v38, %v4771_v38  ;;  %v4099_v38 = vcombine.low %v1588_v53, %v1596_v54  ;;  %v1601_v53 = vld [vmem:[%s5035_s15 + $0xe8] sm:$0xff] }
 0x556   : > { %1332 = vadd.xlane.f32.xlu1 %v1331_v35  ;;  %v4101_v35 = vcombine.low %v1589_v55, %v1597_v56 }
 0x557   : > { %4541 = vmatmul.mubr.msk.bf16.vlgmr.msra.gmra.mrb[12].mxu1 %vm1093_vm12, %v1337_v57  ;;  %v4102_v57 = vcombine.high %v1589_v55, %v1597_v56 }
 0x558   : > { %v4773_v58 = vpop.eup %4772  ;;  %4554 = vmatprep.mubr.msk.bf16.mxu1 %vm4866_vm7, %v4865_v25  ;;  %4551 = vmatpush3.bf16.msra.mxu1 %v4636_v7 }
 0x559   : > { %v1334_v60 = vsel %vm1093_vm12, %v4773_v58, 0.0  ;;  %v1338_v61 = vpack.c.bf16 %v4773_v58, %v4773_v58  ;;  %4552 = vmatprep.subr.bf16.mxu1 %v4865_v25  ;;  %v1574_v58 = vld [vmem:[%s5035_s15 + $0x10] sm:$0xff] }
 0x55a   : > { %1110 = vadd.xlane.f32.xlu1 %v1109_v59  ;;  %1335 = vadd.xlane.f32.xlu0 %v1334_v60  ;;  %v1582_v59 = vld [vmem:[%s5035_s15 + $0x50] sm:$0xff]  ;;  %v1575_v60 = vld [vmem:[%s5035_s15 + $0x18] sm:$0xff] }
 0x55b   : > { %4547 = vmatmul.mubr.msk.bf16.vlgmr.msra.gmra.mrb[16].mxu0 %vm1093_vm12, %v1338_v61  ;;  %v4873_v61 = vmov 0  }
 0x55c   : > { %4553 = vmatpush3.bf16.msra.mxu1 %v4637_v8  ;;  %1853 = vmatpush1.bf16.msra.mxu0 %v4083_v49  ;;  %v1592_v49 = vld [vmem:[%s5035_s15 + $0xa0] sm:$0xff] }
 0x55d   : > { %1895 = vmatprep.subr.bf16.mxu1 %v4086_v52  ;;  %1854 = vmatprep.subr.bf16.mxu0 %v4100_v50  ;;  %v1593_v52 = vld [vmem:[%s5035_s15 + $0xa8] sm:$0xff] }
 0x55e   : > { %1107 = vadd.xlane.f32.xlu0 %v1106_v62  ;;  %1884 = vmatprep.mubr.bf16.mxu0 %v4873_v61  ;;  %v4088_v62 = vcombine.high %v1574_v58, %v1582_v59  ;;  %v4110_v56 = vcombine.high %v1593_v52, %v1601_v53 }
 0x560   : > { %1855 = vmatpush1.bf16.msra.mxu0 %v4099_v38  ;;  %v1578_v38 = vld [vmem:[%s5035_s15 + $0x30] sm:$0xff] }
 0x561   : > { %1938 = vmatprep.subr.bf16.mxu0 %v4088_v62 }
 0x5e3   : > { %v1333_v63 = vpop.xlane.xlu1 %1332 }
 0x5e7   : > { %v1111_v0 = vpop.xlane.xlu1 %1110  ;;  %v1336_v1 = vpop.xlane.xlu0 %1335 }
 0x5e8   : > { %4774 = vrcp.f32 %v1111_v0  ;;  %v4087_v0 = vcombine.low %v1574_v58, %v1582_v59  ;;  %v1587_v58 = vld [vmem:[%s5035_s15 + $0x78] sm:$0xff] }
 0x5eb   : > { %v1108_v2 = vpop.xlane.xlu0 %1107 }
 0x5ec   : > { %4776 = vrcp.f32 %v1108_v2 }
 0x5ed   : > { %4778 = vrcp.f32 %v1333_v63  ;;  %v1583_v63 = vld [vmem:[%s5035_s15 + $0x58] sm:$0xff] }
 0x5ee   : > { %4780 = vrcp.f32 %v1336_v1  ;;  %v4089_v1 = vcombine.low %v1575_v60, %v1583_v63  ;;  %v4090_v2 = vcombine.high %v1575_v60, %v1583_v63  ;;  %v4109_v60 = vcombine.low %v1593_v52, %v1601_v53 }
 0x5ef   : > { %v1611_v52 = vsub.s32 0, %v5123_v46  ;;  %v1619_v53 = vsub.s32 2, %v5123_v46 }
 0x5f2   : > { %v4775_v3 = vpop.eup %4774 }
 0x5f3   : > { %v1214_v4 = vmul.f32 %v4775_v3, %v1205_v23 }
 0x5f5   : > { %1216 = vst.msk [vmem:[#allocation4 + $0x8] sm:$0xff] %vm995_vm9, %v1214_v4 }
 0x5f6   : > { %v4777_v5 = vpop.eup %4776 }
 0x5f7   : > { %v1213_v6 = vmul.f32 %v4777_v5, %v5167_v19  ;;  %v4779_v9 = vpop.eup %4778 }
 0x5f8   : > { %v4781_v15 = vpop.eup %4780 }
 0x5f9   : > { %1215 = vst.msk [vmem:[#allocation4] sm:$0xff] %vm995_vm9, %v1213_v6 }
 0x62a   : > { %v1381_v10 = vpop.f32.mrb[12].mxu1 }
 0x62b   : > { %v1437_v11 = vmul.f32 %v4779_v9, %v1381_v10  ;;  %v4542_v12 = vpop.f32.mrb[13].mxu1 }
 0x62c   : > { %v1384_v13 = vpop.f32.mrb[14].mxu1 }
 0x62d   : > { %1441 = vrot.lane.b32.xlu0 %v1437_v11, %s4872_s24  ;;  %v4543_v14 = vpop.f32.mrb[15].mxu1 }
 0x62e   : > { %v1429_v16 = vpop.f32.mrb[16].mxu0 }
 0x62f   : > { %v1438_v17 = vmul.f32 %v4781_v15, %v1429_v16  ;;  %v4548_v18 = vpop.f32.mrb[17].mxu0 }
 0x630   : > { %v1432_v19 = vpop.f32.mrb[18].mxu0 }
 0x631   : > { %1443 = vrot.lane.b32.xlu1 %v1438_v17, %s4872_s24  ;;  %v4549_v20 = vpop.f32.mrb[19].mxu0 }
 0x69f   : > { %v1442_v21 = vpop.permute.xlu0 %1441 }
 0x6a0   : > { %1448 = vst.msk [vmem:[#allocation4] sm:$0xff] %vm1447_vm13, %v1442_v21  ;;  %v4081_v21 = vld [vmem:[%s5640_s29] ss:$0 sm:$0xff] }
 0x6a3   : > { %v1444_v25 = vpop.permute.xlu1 %1443 }
 0x6a4   : > { %1449 = vst.msk [vmem:[#allocation4 + $0x8] sm:$0xff] %vm1447_vm13, %v1444_v25 }
 0x6a7   : > { %v1450_v22 = vld [vmem:[#allocation4] sm:$0xff] }
 0x6ab   : > { %v1451_v23 = vld [vmem:[#allocation4 + $0x8] sm:$0xff] }
 0x6ac   : > { %v1456_v24 = vpack.c.bf16 %v1451_v23, %v1450_v22 }
 0x6ae   : > { %4555 = vmatmul.mubr.msk.bf16.vlgmr.msra.gmra.mrb[16].mxu1 %vm927_vm8, %v1456_v24 }
 0x6af   : > { %1896 = vmatpush1.bf16.msra.mxu1 %v4085_v51  ;;  %1927 = vmatprep.mubr.bf16.mxu1 %v4873_v61  ;;  %v1600_v51 = vld [vmem:[%s5035_s15 + $0xe0] sm:$0xff] }
 0x6b0   : > { %1897 = vmatprep.subr.bf16.mxu1 %v4102_v57  ;;  %v4108_v50 = vcombine.high %v1592_v49, %v1600_v51  ;;  %v1579_v57 = vld [vmem:[%s5035_s15 + $0x38] sm:$0xff]  ;;  %v4107_v59 = vcombine.low %v1592_v49, %v1600_v51  ;;  %v5330_v49 = vld [vmem:[%s5040_s5 + $0x8] sm:$0xff] }
 0x6b1   : > { %v4098_v63 = vcombine.high %v1579_v57, %v1587_v58 }
 0x6b3   : > { %1898 = vmatpush1.bf16.msra.mxu1 %v4101_v35  ;;  %v1586_v35 = vld [vmem:[%s5035_s15 + $0x70] sm:$0xff] }
 0x6b4   : > { %1981 = vmatprep.subr.bf16.mxu1 %v4090_v2  ;;  %v4096_v62 = vcombine.high %v1578_v38, %v1586_v35  ;;  %v1595_v2 = vld [vmem:[%s5035_s15 + $0xb8] sm:$0xff] }
 0x781   : > { %v1513_v29 = vpop.f32.mrb[16].mxu1 }
 0x782   : > { %v1514_v30 = vadd.f32 %v4077_v26, %v1513_v29  ;;  %v4556_v31 = vpop.f32.mrb[17].mxu1  ;;  %v4082_v29 = vld [vmem:[%s5641_s17] ss:$0 sm:$0xff] }
 0x783   : > { %v1516_v32 = vpop.f32.mrb[18].mxu1  ;;  %v1590_v31 = vld [vmem:[%s5035_s15 + $0x90] sm:$0xff] }
 0x784   : > { %v5203_v33 = vadd.f32 %v1514_v30, %v5079_v27  ;;  %v1517_v34 = vadd.f32 %v4077_v26, %v1516_v32  ;;  %v4557_v36 = vpop.f32.mrb[19].mxu1  ;;  %v1598_v32 = vld [vmem:[%s5035_s15 + $0xd0] sm:$0xff] }
 0x785   : > { %v1599_v36 = vld [vmem:[%s5035_s15 + $0xd8] sm:$0xff]  ;;  %v4103_v44 = vcombine.low %v1590_v31, %v1598_v32 }
 0x786   : > { %v5206_v37 = vadd.f32 %v1517_v34, %v5081_v28  ;;  %v1524_v39 = vsel %vm927_vm8, %v5203_v33, 0.0  ;;  %v1532_v27 = vmul.f32 %v5203_v33, %v5203_v33  ;;  %v1591_v34 = vld [vmem:[%s5035_s15 + $0x98] sm:$0xff] }
 0x787   : > { %1525 = vadd.xlane.f32.xlu1 %v1524_v39  ;;  %v4105_v45 = vcombine.low %v1591_v34, %v1599_v36 }
 0x788   : > { %v1527_v40 = vsel %vm927_vm8, %v5206_v37, 0.0  ;;  %v1533_v41 = vmul.f32 %v5206_v37, %v5206_v37  ;;  %v1534_v28 = vsel %vm927_vm8, %v1532_v27, 0.0  ;;  %v1576_v27 = vld [vmem:[%s5035_s15 + $0x20] sm:$0xff] }
 0x789   : > { %1528 = vadd.xlane.f32.xlu0 %v1527_v40  ;;  %v4104_v40 = vcombine.high %v1590_v31, %v1598_v32  ;;  %v4658_v31 = vld [vmem:[%s5050_s23 + $0x68] sm:$0xff]  }
 0x78a   : > { %v1537_v42 = vsel %vm927_vm8, %v1533_v41, 0.0  ;;  %v4106_v41 = vcombine.high %v1591_v34, %v1599_v36  ;;  %v4659_v32 = vld [vmem:[%s5050_s23 + $0xe8] sm:$0xff]  }
 0x78b   : > { %1538 = vadd.xlane.f32.xlu1 %v1537_v42  ;;  %v1584_v42 = vld [vmem:[%s5035_s15 + $0x60] sm:$0xff]  ;;  %v4660_v34 = vld [vmem:[%s5050_s23 + $0x28] sm:$0xff]  }
 0x78c   : > { %v4092_v47 = vcombine.high %v1576_v27, %v1584_v42  ;;  %v4091_v54 = vcombine.low %v1576_v27, %v1584_v42  ;;  %v4661_v36 = vld [vmem:[%s5050_s23 + $0xa8] sm:$0xff]   ;;  %v4665_v27 = vld [vmem:[%s5050_s23 + $0xb0] sm:$0xff]   ;;  %v4666_v42 = vld [vmem:[%s5050_s23 + $0x78] sm:$0xff]  }
 0x78d   : > { %1535 = vadd.xlane.f32.xlu0 %v1534_v28  ;;  %v1577_v28 = vld [vmem:[%s5035_s15 + $0x28] sm:$0xff] }
 0x78e   : > { %v4094_v48 = vcombine.high %v1577_v28, %v1585_v43  ;;  %v4093_v55 = vcombine.low %v1577_v28, %v1585_v43  ;;  %v4667_v28 = vld [vmem:[%s5050_s23 + $0xf8] sm:$0xff]  }
 0x78f   : > { %v4668_v43 = vld [vmem:[%s5050_s23 + $0x38] sm:$0xff]  }
 0x814   : > { %v1526_v3 = vpop.xlane.xlu1 %1525 }
 0x815   : > { %v1530_v5 = vmul.f32 0.03125, %v1526_v3  ;;  %v1603_v3 = vld [vmem:[%s5035_s15 + $0xf8] sm:$0xff] }
 0x816   : > { %v1529_v4 = vpop.xlane.xlu0 %1528 }
 0x817   : > { %v1531_v6 = vmul.f32 0.03125, %v1529_v4  ;;  %v1542_v11 = vmul.f32 %v1530_v5, %v1530_v5  ;;  %v1548_v25 = vsub.f32 %v5203_v33, %v1530_v5  ;;  %v4095_v4 = vcombine.low %v1578_v38, %v1586_v35 }
 0x818   : > { %v1539_v7 = vpop.xlane.xlu1 %1538  ;;  %v4097_v5 = vcombine.low %v1579_v57, %v1587_v58  ;;  %v1627_v58 = vsub.s32 4, %v5123_v46 }
 0x819   : > { %v1543_v8 = vmul.f32 %v1531_v6, %v1531_v6  ;;  %v1541_v9 = vmul.f32 0.03125, %v1539_v7  ;;  %v1549_v19 = vsub.f32 %v5206_v37, %v1531_v6  ;;  %v4114_v7 = vcombine.high %v1595_v2, %v1603_v3 }
 0x81a   : > { %v1536_v10 = vpop.xlane.xlu0 %1535 }
 0x81b   : > { %v1545_v12 = vsub.f32 %v1541_v9, %v1543_v8  ;;  %v1540_v13 = vmul.f32 0.03125, %v1536_v10  ;;  %v4113_v9 = vcombine.low %v1595_v2, %v1603_v3  ;;  %v4638_v10 = vld [vmem:[%s5050_s23 + $0x40] sm:$0xff]  }
 0x81d   : > { %v1547_v14 = vmax.f32 %v1545_v12, 0.0  ;;  %v1544_v15 = vsub.f32 %v1540_v13, %v1542_v11  ;;  %v4639_v11 = vld [vmem:[%s5050_s23 + $0xc0] sm:$0xff]  }
 0x81e   : > { %v4640_v12 = vld [vmem:[%s5050_s23] sm:$0xff]  }
 0x81f   : > { %v1551_v16 = vadd.f32 1e-05, %v1547_v14  ;;  %v1546_v17 = vmax.f32 %v1544_v15, 0.0  ;;  %v4641_v13 = vld [vmem:[%s5050_s23 + $0x80] sm:$0xff]   ;;  %v4642_v14 = vld [vmem:[%s5050_s23 + $0x48] sm:$0xff]  }
 0x820   : > { %v4643_v15 = vld [vmem:[%s5050_s23 + $0xc8] sm:$0xff]  }
 0x821   : > { %4782 = vrsqrt.f32 %v1551_v16  ;;  %v1550_v18 = vadd.f32 1e-05, %v1546_v17  ;;  %v4645_v16 = vld [vmem:[%s5050_s23 + $0x88] sm:$0xff]   ;;  %v4646_v17 = vld [vmem:[%s5050_s23 + $0x50] sm:$0xff]  }
 0x823   : > { %4784 = vrsqrt.f32 %v1550_v18  ;;  %v4647_v18 = vld [vmem:[%s5050_s23 + $0xd0] sm:$0xff]  }
 0x82b   : > { %v4783_v20 = vpop.eup %4782 }
 0x82c   : > { %v1555_v22 = vmul.f32 %v4783_v20, %v1549_v19  ;;  %v4648_v19 = vld [vmem:[%s5050_s23 + $0x10] sm:$0xff]  }
 0x82d   : > { %v4785_v23 = vpop.eup %4784  ;;  %v4649_v20 = vld [vmem:[%s5050_s23 + $0x90] sm:$0xff]  }
 0x82e   : > { %v1563_v24 = vmul.f32 %v4081_v21, %v1555_v22  ;;  %v1554_v26 = vmul.f32 %v4785_v23, %v1548_v25  ;;  %v4651_v25 = vld [vmem:[%s5050_s23 + $0xd8] sm:$0xff]  }
 0x82f   : > { %v4652_v22 = vld [vmem:[%s5050_s23 + $0x18] sm:$0xff]  }
 0x830   : > { %v1562_v30 = vmul.f32 %v4081_v21, %v1554_v26  ;;  %v5248_v37 = vadd.f32 %v4082_v29, %v1563_v24  ;;  %v4650_v21 = vld [vmem:[%s5050_s23 + $0x58] sm:$0xff]   ;;  %v4654_v24 = vld [vmem:[%s5050_s23 + $0x60] sm:$0xff]  }
 0x831   : > { %v4653_v23 = vld [vmem:[%s5050_s23 + $0x98] sm:$0xff]   ;;  %v4655_v26 = vld [vmem:[%s5050_s23 + $0xe0] sm:$0xff]  }
 0x832   : > { %v5250_v33 = vadd.f32 %v4082_v29, %v1562_v30  ;;  %v4656_v29 = vld [vmem:[%s5050_s23 + $0x20] sm:$0xff]  }
 0x833   : > { %v4657_v30 = vld [vmem:[%s5050_s23 + $0xa0] sm:$0xff]  }
 0x834   : > { %v5254_v39 = vpack.c.bf16 %v5248_v37, %v5250_v33 }
 0x836   : > { %4115 = vmatmul.mubr.msk.bf16.vlgmr.msra.gmra.mrb[20].mxu0 %vm927_vm8, %v5254_v39  ;;  %4116 = vmatmul.mubr.msk.bf16.vlgmr.msra.gmra.mrb[20].mxu1 %vm927_vm8, %v5254_v39 }
 0x837   : > { %1939 = vmatpush1.bf16.msra.mxu0 %v4087_v0  ;;  %1982 = vmatpush1.bf16.msra.mxu1 %v4089_v1  ;;  %v1594_v0 = vld [vmem:[%s5035_s15 + $0xb0] sm:$0xff] }
 0x838   : > { %1940 = vmatprep.subr.bf16.mxu0 %v4104_v40  ;;  %1983 = vmatprep.subr.bf16.mxu1 %v4106_v41  ;;  %v1602_v1 = vld [vmem:[%s5035_s15 + $0xf0] sm:$0xff] }
 0x839   : > { %1970 = vmatprep.mubr.bf16.mxu0 %v4873_v61  ;;  %2013 = vmatprep.mubr.bf16.mxu1 %v4873_v61  ;;  %v4112_v6 = vcombine.high %v1594_v0, %v1602_v1  ;;  %v4111_v8 = vcombine.low %v1594_v0, %v1602_v1  ;;  %v4663_v40 = vld [vmem:[%s5050_s23 + $0xf0] sm:$0xff]  }
 0x83a   : > { %v4664_v41 = vld [vmem:[%s5050_s23 + $0x30] sm:$0xff]  }
 0x83b   : > { %1941 = vmatpush1.bf16.msra.mxu0 %v4103_v44  ;;  %1984 = vmatpush1.bf16.msra.mxu1 %v4105_v45  ;;  %v4669_v44 = vld [vmem:[%s5050_s23 + $0xb8] sm:$0xff]   ;;  %v4670_v45 = vld [vmem:[%s5050_s23 + $0x140] sm:$0xff]  }
 0x83c   : > { %2024 = vmatprep.subr.bf16.mxu0 %v4092_v47  ;;  %2067 = vmatprep.subr.bf16.mxu1 %v4094_v48  ;;  %v4671_v47 = vld [vmem:[%s5050_s23 + $0x1c0] sm:$0xff]   ;;  %v1635_v48 = vsub.s32 6, %v5123_v46 }
 0x83e   : > { %4117 = vmatmul.mubr.msk.bf16.vlgmr.msra.gmra.mrb[24].mxu0 %vm927_vm8, %v5254_v39  ;;  %4118 = vmatmul.mubr.msk.bf16.vlgmr.msra.gmra.mrb[24].mxu1 %vm927_vm8, %v5254_v39  ;;  %v5333_v51 = vrot.slane %v5330_v49, %v1635_v48 }
 0x83f   : > { %2025 = vmatpush1.bf16.msra.mxu0 %v4091_v54  ;;  %2068 = vmatpush1.bf16.msra.mxu1 %v4093_v55  ;;  %v1605_v54 = vld [vmem:[%s5040_s5] sm:$0xff]  ;;  %v1615_v55 = vsub.s32 1, %v5123_v46 }
 0x840   : > { %2026 = vmatprep.subr.bf16.mxu0 %v4108_v50  ;;  %2069 = vmatprep.subr.bf16.mxu1 %v4110_v56  ;;  %v1623_v50 = vsub.s32 3, %v5123_v46  ;;  %v1612_v56 = vrot.slane %v1605_v54, %v1611_v52  ;;  %v1620_v38 = vrot.slane %v1605_v54, %v1619_v53 }
 0x841   : > { %2056 = vmatprep.mubr.bf16.mxu0 %v4873_v61  ;;  %2099 = vmatprep.mubr.bf16.mxu1 %v4873_v61  ;;  %v1616_v35 = vrot.slane %v1605_v54, %v1615_v55 }
 0x842   : > { %v1624_v57 = vrot.slane %v1605_v54, %v1623_v50 }
 0x843   : > { %2027 = vmatpush1.bf16.msra.mxu0 %v4107_v59  ;;  %2070 = vmatpush1.bf16.msra.mxu1 %v4109_v60 }
 0x844   : > { %2110 = vmatprep.subr.bf16.mxu0 %v4096_v62  ;;  %2153 = vmatprep.subr.bf16.mxu1 %v4098_v63  ;;  %v1631_v62 = vsub.s32 5, %v5123_v46  ;;  %v1639_v63 = vsub.s32 7, %v5123_v46 }
 0x846   : > { %4119 = vmatmul.mubr.msk.bf16.vlgmr.msra.gmra.mrb[28].mxu0 %vm927_vm8, %v5254_v39  ;;  %4120 = vmatmul.mubr.msk.bf16.vlgmr.msra.gmra.mrb[28].mxu1 %vm927_vm8, %v5254_v39 }
 0x847   : > { %2111 = vmatpush1.bf16.msra.mxu0 %v4095_v4  ;;  %2154 = vmatpush1.bf16.msra.mxu1 %v4097_v5 }
 0x848   : > { %2112 = vmatprep.subr.bf16.mxu0 %v4112_v6  ;;  %2155 = vmatprep.subr.bf16.mxu1 %v4114_v7 }
 0x849   : > { %2142 = vmatprep.mubr.bf16.mxu0 %v4873_v61  ;;  %2185 = vmatprep.mubr.bf16.mxu1 %v4873_v61  ;;  %v4644_v61 = vld [vmem:[%s5050_s23 + $0x8] sm:$0xff]  }
 0x84b   : > { %2113 = vmatpush1.bf16.msra.mxu0 %v4111_v8  ;;  %2156 = vmatpush1.bf16.msra.mxu1 %v4113_v9 }
 0x84c   : > { %4300 = vmatprep.subr.bf16.mxu0 %v4638_v10  ;;  %4322 = vmatprep.subr.bf16.mxu1 %v4639_v11 }
 0x84e   : > { %4121 = vmatmul.mubr.msk.bf16.vlgmr.msra.gmra.mrb[32].mxu0 %vm927_vm8, %v5254_v39  ;;  %4122 = vmatmul.mubr.msk.bf16.vlgmr.msra.gmra.mrb[32].mxu1 %vm927_vm8, %v5254_v39  ;;  %v4662_v39 = vld [vmem:[%s5050_s23 + $0x70] sm:$0xff]  }
 0x84f   : > { %4301 = vmatpush3.bf16.msra.mxu0 %v4640_v12  ;;  %4323 = vmatpush3.bf16.msra.mxu1 %v4641_v13  ;;  %v1628_v12 = vrot.slane %v1605_v54, %v1627_v58  ;;  %v1636_v13 = vrot.slane %v1605_v54, %v1635_v48 }
 0x850   : > { %4302 = vmatprep.subr.bf16.mxu0 %v4642_v14  ;;  %4324 = vmatprep.subr.bf16.mxu1 %v4643_v15 }
 0x853   : > { %4303 = vmatpush3.bf16.msra.mxu0 %v4644_v61  ;;  %4325 = vmatpush3.bf16.msra.mxu1 %v4645_v16  ;;  %v1632_v61 = vrot.slane %v1605_v54, %v1631_v62  ;;  %v1640_v16 = vrot.slane %v1605_v54, %v1639_v63  ;;  %v1652_v54 = vrot.slane %v5330_v49, %v1619_v53 }
 0x854   : > { %4304 = vmatprep.subr.bf16.mxu0 %v4646_v17  ;;  %4326 = vmatprep.subr.bf16.mxu1 %v4647_v18  ;;  %v1656_v53 = vrot.slane %v5330_v49, %v1623_v50 }
 0x857   : > { %4305 = vmatpush3.bf16.msra.mxu0 %v4648_v19  ;;  %4327 = vmatpush3.bf16.msra.mxu1 %v4649_v20 }
 0x858   : > { %4306 = vmatprep.subr.bf16.mxu0 %v4650_v21  ;;  %4328 = vmatprep.subr.bf16.mxu1 %v4651_v25 }
 0x85b   : > { %4307 = vmatpush3.bf16.msra.mxu0 %v4652_v22  ;;  %4329 = vmatpush3.bf16.msra.mxu1 %v4653_v23 }
 0x85c   : > { %4308 = vmatprep.subr.bf16.mxu0 %v4654_v24  ;;  %4330 = vmatprep.subr.bf16.mxu1 %v4655_v26 }
 0x85f   : > { %4309 = vmatpush3.bf16.msra.mxu0 %v4656_v29  ;;  %4331 = vmatpush3.bf16.msra.mxu1 %v4657_v30 }
 0x860   : > { %4310 = vmatprep.subr.bf16.mxu0 %v4658_v31  ;;  %4332 = vmatprep.subr.bf16.mxu1 %v4659_v32 }
 0x863   : > { %4311 = vmatpush3.bf16.msra.mxu0 %v4660_v34  ;;  %4333 = vmatpush3.bf16.msra.mxu1 %v4661_v36  ;;  %v4672_v34 = vld [vmem:[%s5050_s23 + $0x100] sm:$0xff]  }
 0x864   : > { %4312 = vmatprep.subr.bf16.mxu0 %v4662_v39  ;;  %4334 = vmatprep.subr.bf16.mxu1 %v4663_v40  ;;  %v4673_v36 = vld [vmem:[%s5050_s23 + $0x180] sm:$0xff]  }
 0x867   : > { %4313 = vmatpush3.bf16.msra.mxu0 %v4664_v41  ;;  %4335 = vmatpush3.bf16.msra.mxu1 %v4665_v27 }
 0x868   : > { %4314 = vmatprep.subr.bf16.mxu0 %v4666_v42  ;;  %4336 = vmatprep.subr.bf16.mxu1 %v4667_v28  ;;  %v4674_v42 = vld [vmem:[%s5050_s23 + $0x148] sm:$0xff]  }
 0x869   : > { %v4675_v28 = vld [vmem:[%s5050_s23 + $0x1c8] sm:$0xff]  }
 0x86b   : > { %4315 = vmatpush3.bf16.msra.mxu0 %v4668_v43  ;;  %4337 = vmatpush3.bf16.msra.mxu1 %v4669_v44  ;;  %v1644_v43 = vrot.slane %v5330_v49, %v1611_v52  ;;  %v1648_v52 = vrot.slane %v5330_v49, %v1615_v55  ;;  %v4679_v55 = vld [vmem:[%s5050_s23 + $0x1d0] sm:$0xff]  }
 0x86c   : > { %4344 = vmatprep.subr.bf16.mxu0 %v4670_v45  ;;  %4366 = vmatprep.subr.bf16.mxu1 %v4671_v47 }
 0x909   : > { %v1886_v59 = vpop.f32.mrb[20].mxu0  ;;  %v1929_v60 = vpop.f32.mrb[20].mxu1 }
 0x90a   : > { %v1887_v0 = vadd.f32 %v1886_v59, %v1612_v56  ;;  %v1930_v1 = vadd.f32 %v1929_v60, %v1620_v38  ;;  %v1888_v2 = vpop.f32.mrb[21].mxu0  ;;  %v1931_v3 = vpop.f32.mrb[21].mxu1 }
 0x90b   : > { %v1889_v4 = vadd.f32 %v1888_v2, %v1616_v35  ;;  %v1932_v5 = vadd.f32 %v1931_v3, %v1624_v57  ;;  %v1890_v6 = vpop.f32.mrb[22].mxu0  ;;  %v1933_v7 = vpop.f32.mrb[22].mxu1 }
 0x90c   : > { %v1891_v8 = vadd.f32 %v1890_v6, %v1612_v56  ;;  %v1934_v9 = vadd.f32 %v1933_v7, %v1620_v38  ;;  %v1892_v10 = vpop.f32.mrb[23].mxu0  ;;  %v1935_v11 = vpop.f32.mrb[23].mxu1  ;;  %v2196_v17 = vmax.f32 %v1887_v0, 0.0  ;;  %v2198_v18 = vmax.f32 %v1930_v1, 0.0  ;;  %v4676_v0 = vld [vmem:[%s5050_s23 + $0x108] sm:$0xff]   ;;  %v4678_v6 = vld [vmem:[%s5050_s23 + $0x150] sm:$0xff]  }
 0x90d   : > { %v1893_v14 = vadd.f32 %v1892_v10, %v1616_v35  ;;  %v1936_v15 = vadd.f32 %v1935_v11, %v1624_v57  ;;  %v2197_v21 = vmax.f32 %v1889_v4, 0.0  ;;  %v2199_v25 = vmax.f32 %v1932_v5, 0.0  ;;  %v4677_v1 = vld [vmem:[%s5050_s23 + $0x188] sm:$0xff]  }
 0x90e   : > { %v2212_v19 = vmax.f32 %v1891_v8, 0.0  ;;  %v2214_v20 = vmax.f32 %v1934_v9, 0.0 }
 0x90f   : > { %v2213_v22 = vmax.f32 %v1893_v14, 0.0  ;;  %v2215_v23 = vmax.f32 %v1936_v15, 0.0 }
 0x910   : > { %v2228_v24 = vpack.c.bf16 %v2212_v19, %v2196_v17  ;;  %v2230_v26 = vpack.c.bf16 %v2214_v20, %v2198_v18 }
 0x911   : > { %v2229_v29 = vpack.c.bf16 %v2213_v22, %v2197_v21  ;;  %v2231_v30 = vpack.c.bf16 %v2215_v23, %v2199_v25  ;;  %v1972_v31 = vpop.f32.mrb[24].mxu0  ;;  %v2015_v32 = vpop.f32.mrb[24].mxu1  ;;  %v4682_v21 = vld [vmem:[%s5050_s23 + $0x158] sm:$0xff]  }
 0x912   : > { %v1973_v39 = vadd.f32 %v1972_v31, %v1628_v12  ;;  %v2016_v40 = vadd.f32 %v2015_v32, %v1636_v13  ;;  %v1974_v41 = vpop.f32.mrb[25].mxu0  ;;  %v2017_v27 = vpop.f32.mrb[25].mxu1  ;;  %v4683_v25 = vld [vmem:[%s5050_s23 + $0x1d8] sm:$0xff]  }
 0x913   : > { %v1975_v44 = vadd.f32 %v1974_v41, %v1632_v61  ;;  %v2018_v45 = vadd.f32 %v2017_v27, %v1640_v16  ;;  %v1976_v47 = vpop.f32.mrb[26].mxu0  ;;  %v2019_v48 = vpop.f32.mrb[26].mxu1  ;;  %3307 = vmatprep.mubr.bf16.mxu0 %v2229_v29  ;;  %3348 = vmatprep.mubr.bf16.mxu1 %v2231_v30  ;;  %v4684_v41 = vld [vmem:[%s5050_s23 + $0x118] sm:$0xff]  }
 0x914   : > { %v1977_v56 = vadd.f32 %v1976_v47, %v1628_v12  ;;  %v2020_v38 = vadd.f32 %v2019_v48, %v1636_v13  ;;  %v1978_v35 = vpop.f32.mrb[27].mxu0  ;;  %v2021_v57 = vpop.f32.mrb[27].mxu1  ;;  %3308 = vmatmul.mubr.bf16.vlgmr.msra.gmra.mrb[36].mxu0 %v2228_v24  ;;  %3349 = vmatmul.mubr.bf16.vlgmr.msra.gmra.mrb[36].mxu1 %v2230_v26  ;;  %v2200_v2 = vmax.f32 %v1973_v39, 0.0  ;;  %v2202_v3 = vmax.f32 %v2016_v40, 0.0  ;;  %v4685_v27 = vld [vmem:[%s5050_s23 + $0x198] sm:$0xff]  }
 0x915   : > { %v1979_v59 = vadd.f32 %v1978_v35, %v1632_v61  ;;  %v2022_v60 = vadd.f32 %v2021_v57, %v1640_v16  ;;  %4345 = vmatpush3.bf16.msra.mxu0 %v4672_v34  ;;  %4367 = vmatpush3.bf16.msra.mxu1 %v4673_v36  ;;  %v2201_v7 = vmax.f32 %v1975_v44, 0.0  ;;  %v2203_v8 = vmax.f32 %v2018_v45, 0.0  ;;  %v4680_v61 = vld [vmem:[%s5050_s23 + $0x110] sm:$0xff]  }
 0x916   : > { %v2216_v4 = vmax.f32 %v1977_v56, 0.0  ;;  %v2218_v5 = vmax.f32 %v2020_v38, 0.0  ;;  %4346 = vmatprep.subr.bf16.mxu0 %v4674_v42  ;;  %4368 = vmatprep.subr.bf16.mxu1 %v4675_v28  ;;  %v4681_v16 = vld [vmem:[%s5050_s23 + $0x190] sm:$0xff]   ;;  %v1660_v34 = vrot.slane %v5330_v49, %v1627_v58  ;;  %v1664_v36 = vrot.slane %v5330_v49, %v1631_v62  ;;  %v4686_v58 = vld [vmem:[%s5050_s23 + $0x160] sm:$0xff]  }
 0x917   : > { %v2217_v9 = vmax.f32 %v1979_v59, 0.0  ;;  %v2219_v10 = vmax.f32 %v2022_v60, 0.0  ;;  %v1672_v42 = vrot.slane %v5330_v49, %v1639_v63  ;;  %v4687_v62 = vld [vmem:[%s5050_s23 + $0x1e0] sm:$0xff]  }
 0x918   : > { %v5369_v11 = vpack.c.bf16 %v2216_v4, %v2200_v2  ;;  %v5371_v12 = vpack.c.bf16 %v2218_v5, %v2202_v3  ;;  %v4689_v59 = vld [vmem:[%s5050_s23 + $0x1a0] sm:$0xff]   ;;  %v4690_v2 = vld [vmem:[%s5050_s23 + $0x168] sm:$0xff]  }
 0x919   : > { %v2233_v50 = vpack.c.bf16 %v2217_v9, %v2201_v7  ;;  %v2235_v13 = vpack.c.bf16 %v2219_v10, %v2203_v8  ;;  %4347 = vmatpush3.bf16.msra.mxu0 %v4676_v0  ;;  %4369 = vmatpush3.bf16.msra.mxu1 %v4677_v1  ;;  %v2058_v14 = vpop.f32.mrb[28].mxu0  ;;  %v2101_v15 = vpop.f32.mrb[28].mxu1  ;;  %v4691_v3 = vld [vmem:[%s5050_s23 + $0x1e8] sm:$0xff]  }
 0x91a   : > { %v2059_v17 = vadd.f32 %v2058_v14, %v1644_v43  ;;  %v2102_v18 = vadd.f32 %v2101_v15, %v1652_v54  ;;  %v2060_v19 = vpop.f32.mrb[29].mxu0  ;;  %v2103_v20 = vpop.f32.mrb[29].mxu1  ;;  %4348 = vmatprep.subr.bf16.mxu0 %v4678_v6  ;;  %4370 = vmatprep.subr.bf16.mxu1 %v4679_v55  ;;  %v4692_v14 = vld [vmem:[%s5050_s23 + $0x128] sm:$0xff]  }
 0x91b   : > { %v2061_v22 = vadd.f32 %v2060_v19, %v1648_v52  ;;  %v2104_v23 = vadd.f32 %v2103_v20, %v1656_v53  ;;  %v2062_v24 = vpop.f32.mrb[30].mxu0  ;;  %v2105_v26 = vpop.f32.mrb[30].mxu1  ;;  %3389 = vmatprep.mubr.bf16.mxu0 %v2233_v50  ;;  %3430 = vmatprep.mubr.bf16.mxu1 %v2235_v13  ;;  %v4693_v15 = vld [vmem:[%s5050_s23 + $0x1a8] sm:$0xff]   ;;  %v4694_v19 = vld [vmem:[%s5050_s23 + $0x170] sm:$0xff]  }
 0x91c   : > { %v2063_v29 = vadd.f32 %v2062_v24, %v1644_v43  ;;  %v2106_v30 = vadd.f32 %v2105_v26, %v1652_v54  ;;  %v2064_v31 = vpop.f32.mrb[31].mxu0  ;;  %v2107_v32 = vpop.f32.mrb[31].mxu1  ;;  %v2204_v28 = vmax.f32 %v2059_v17, 0.0  ;;  %v2206_v43 = vmax.f32 %v2102_v18, 0.0 }
 0x91d   : > { %v2065_v39 = vadd.f32 %v2064_v31, %v1648_v52  ;;  %v2108_v40 = vadd.f32 %v2107_v32, %v1656_v53  ;;  %4349 = vmatpush3.bf16.msra.mxu0 %v4680_v61  ;;  %4371 = vmatpush3.bf16.msra.mxu1 %v4681_v16  ;;  %v2205_v47 = vmax.f32 %v2061_v22, 0.0  ;;  %v2207_v48 = vmax.f32 %v2104_v23, 0.0  ;;  %v4688_v52 = vld [vmem:[%s5050_s23 + $0x120] sm:$0xff]   ;;  %v4697_v31 = vld [vmem:[%s5050_s23 + $0x1b0] sm:$0xff]   ;;  %v4698_v32 = vld [vmem:[%s5050_s23 + $0x178] sm:$0xff]  }
 0x91e   : > { %v2220_v44 = vmax.f32 %v2063_v29, 0.0  ;;  %v2222_v45 = vmax.f32 %v2106_v30, 0.0  ;;  %4350 = vmatprep.subr.bf16.mxu0 %v4682_v21  ;;  %4372 = vmatprep.subr.bf16.mxu1 %v4683_v25  ;;  %v4696_v30 = vld [vmem:[%s5050_s23 + $0x130] sm:$0xff]  }
 0x91f   : > { %v2221_v54 = vmax.f32 %v2065_v39, 0.0  ;;  %v2223_v56 = vmax.f32 %v2108_v40, 0.0  ;;  %v4701_v39 = vld [vmem:[%s5050_s23 + $0x1b8] sm:$0xff]   ;;  %v4702_v40 = vld [vmem:[%s5050_s23 + $0x240] sm:$0xff]  }
 0x920   : > { %v5390_v38 = vpack.c.bf16 %v2220_v44, %v2204_v28  ;;  %v5392_v46 = vpack.c.bf16 %v2222_v45, %v2206_v43  ;;  %v4706_v28 = vld [vmem:[%s5050_s23 + $0x248] sm:$0xff]  }
 0x921   : > { %v5394_v49 = vpack.c.bf16 %v2221_v54, %v2205_v47  ;;  %v5396_v63 = vpack.c.bf16 %v2223_v56, %v2207_v48  ;;  %4351 = vmatpush3.bf16.msra.mxu0 %v4684_v41  ;;  %4373 = vmatpush3.bf16.msra.mxu1 %v4685_v27  ;;  %v2144_v35 = vpop.f32.mrb[32].mxu0  ;;  %v2187_v57 = vpop.f32.mrb[32].mxu1  ;;  %v4703_v41 = vld [vmem:[%s5050_s23 + $0x2c0] sm:$0xff]   ;;  %v4707_v43 = vld [vmem:[%s5050_s23 + $0x2c8] sm:$0xff]   ;;  %v4714_v47 = vld [vmem:[%s5050_s23 + $0x258] sm:$0xff]  }
 0x922   : > { %v2145_v60 = vadd.f32 %v2144_v35, %v1660_v34  ;;  %v2188_v0 = vadd.f32 %v2187_v57, %v5333_v51  ;;  %v2146_v1 = vpop.f32.mrb[33].mxu0  ;;  %v2189_v53 = vpop.f32.mrb[33].mxu1  ;;  %4352 = vmatprep.subr.bf16.mxu0 %v4686_v58  ;;  %4374 = vmatprep.subr.bf16.mxu1 %v4687_v62  ;;  %v4704_v27 = vld [vmem:[%s5050_s23 + $0x200] sm:$0xff]   ;;  %v4708_v44 = vld [vmem:[%s5050_s23 + $0x208] sm:$0xff]   ;;  %v4710_v58 = vld [vmem:[%s5050_s23 + $0x250] sm:$0xff]  }
 0x923   : > { %v2147_v4 = vadd.f32 %v2146_v1, %v1664_v36  ;;  %v2190_v5 = vadd.f32 %v2189_v53, %v1672_v42  ;;  %v2148_v6 = vpop.f32.mrb[34].mxu0  ;;  %v2191_v55 = vpop.f32.mrb[34].mxu1  ;;  %v4709_v45 = vld [vmem:[%s5050_s23 + $0x288] sm:$0xff]   ;;  %v4713_v62 = vld [vmem:[%s5050_s23 + $0x290] sm:$0xff]   ;;  %v4715_v48 = vld [vmem:[%s5050_s23 + $0x2d8] sm:$0xff]  }
 0x924   : > { %v2149_v7 = vadd.f32 %v2148_v6, %v1660_v34  ;;  %v2192_v8 = vadd.f32 %v2191_v55, %v5333_v51  ;;  %v2150_v9 = vpop.f32.mrb[35].mxu0  ;;  %v2193_v10 = vpop.f32.mrb[35].mxu1  ;;  %v2208_v61 = vmax.f32 %v2145_v60, 0.0  ;;  %v2210_v16 = vmax.f32 %v2188_v0, 0.0  ;;  %v4695_v51 = vld [vmem:[%s5050_s23 + $0x1f0] sm:$0xff]   ;;  %v4699_v34 = vld [vmem:[%s5050_s23 + $0x1f8] sm:$0xff]  }
 0x925   : > { %v2151_v50 = vadd.f32 %v2150_v9, %v1664_v36  ;;  %v2194_v13 = vadd.f32 %v2193_v10, %v1672_v42  ;;  %4353 = vmatpush3.bf16.msra.mxu0 %v4688_v52  ;;  %4375 = vmatpush3.bf16.msra.mxu1 %v4689_v59  ;;  %v2209_v20 = vmax.f32 %v2147_v4, 0.0  ;;  %v2211_v21 = vmax.f32 %v2190_v5, 0.0  ;;  %v4700_v36 = vld [vmem:[%s5050_s23 + $0x138] sm:$0xff]   ;;  %v4705_v42 = vld [vmem:[%s5050_s23 + $0x280] sm:$0xff]   ;;  %v4722_v52 = vld [vmem:[%s5050_s23 + $0x268] sm:$0xff]  }
 0x926   : > { %v2224_v17 = vmax.f32 %v2149_v7, 0.0  ;;  %v2226_v18 = vmax.f32 %v2192_v8, 0.0  ;;  %4354 = vmatprep.subr.bf16.mxu0 %v4690_v2  ;;  %4376 = vmatprep.subr.bf16.mxu1 %v4691_v3  ;;  %v4716_v54 = vld [vmem:[%s5050_s23 + $0x218] sm:$0xff]   ;;  %v4720_v35 = vld [vmem:[%s5050_s23 + $0x220] sm:$0xff]   ;;  %v4723_v59 = vld [vmem:[%s5050_s23 + $0x2e8] sm:$0xff]  }
 0x927   : > { %v2225_v25 = vmax.f32 %v2151_v50, 0.0  ;;  %v2227_v22 = vmax.f32 %v2194_v13, 0.0  ;;  %v4717_v56 = vld [vmem:[%s5050_s23 + $0x298] sm:$0xff]   ;;  %v4721_v57 = vld [vmem:[%s5050_s23 + $0x2a0] sm:$0xff]   ;;  %v4724_v60 = vld [vmem:[%s5050_s23 + $0x228] sm:$0xff]  }
 0x928   : > { %v5408_v23 = vpack.c.bf16 %v2224_v17, %v2208_v61  ;;  %v5410_v24 = vpack.c.bf16 %v2226_v18, %v2210_v16  ;;  %v4725_v0 = vld [vmem:[%s5050_s23 + $0x2a8] sm:$0xff]   ;;  %v4726_v1 = vld [vmem:[%s5050_s23 + $0x270] sm:$0xff]   ;;  %v4730_v4 = vld [vmem:[%s5050_s23 + $0x278] sm:$0xff]  }
 0x929   : > { %v5412_v26 = vpack.c.bf16 %v2225_v25, %v2209_v20  ;;  %v5414_v29 = vpack.c.bf16 %v2227_v22, %v2211_v21  ;;  %4355 = vmatpush3.bf16.msra.mxu0 %v4692_v14  ;;  %4377 = vmatpush3.bf16.msra.mxu1 %v4693_v15  ;;  %v4727_v53 = vld [vmem:[%s5050_s23 + $0x2f0] sm:$0xff]   ;;  %v4731_v5 = vld [vmem:[%s5050_s23 + $0x2f8] sm:$0xff]   ;;  %v4734_v7 = vld [vmem:[%s5050_s23 + $0x340] sm:$0xff]  }
 0x92a   : > { %4356 = vmatprep.subr.bf16.mxu0 %v4694_v19  ;;  %4378 = vmatprep.subr.bf16.mxu1 %v4695_v51  ;;  %v4728_v2 = vld [vmem:[%s5050_s23 + $0x230] sm:$0xff]   ;;  %v4732_v6 = vld [vmem:[%s5050_s23 + $0x238] sm:$0xff]   ;;  %v4735_v8 = vld [vmem:[%s5050_s23 + $0x3c0] sm:$0xff]  }
 0x92b   : > { %v4729_v3 = vld [vmem:[%s5050_s23 + $0x2b0] sm:$0xff]   ;;  %v4733_v55 = vld [vmem:[%s5050_s23 + $0x2b8] sm:$0xff]   ;;  %v4736_v9 = vld [vmem:[%s5050_s23 + $0x300] sm:$0xff]  }
 0x92c   : > { %v4737_v10 = vld [vmem:[%s5050_s23 + $0x380] sm:$0xff]   ;;  %v4738_v50 = vld [vmem:[%s5050_s23 + $0x348] sm:$0xff]   ;;  %v4742_v61 = vld [vmem:[%s5050_s23 + $0x350] sm:$0xff]  }
 0x92d   : > { %4357 = vmatpush3.bf16.msra.mxu0 %v4696_v30  ;;  %4379 = vmatpush3.bf16.msra.mxu1 %v4697_v31  ;;  %v4739_v13 = vld [vmem:[%s5050_s23 + $0x3c8] sm:$0xff]   ;;  %v4745_v16 = vld [vmem:[%s5050_s23 + $0x390] sm:$0xff]   ;;  %v4746_v17 = vld [vmem:[%s5050_s23 + $0x358] sm:$0xff]  }
 0x92e   : > { %4358 = vmatprep.subr.bf16.mxu0 %v4698_v32  ;;  %4380 = vmatprep.subr.bf16.mxu1 %v4699_v34  ;;  %v4740_v14 = vld [vmem:[%s5050_s23 + $0x308] sm:$0xff]   ;;  %v4747_v18 = vld [vmem:[%s5050_s23 + $0x3d8] sm:$0xff]   ;;  %v4750_v20 = vld [vmem:[%s5050_s23 + $0x360] sm:$0xff]  }
 0x92f   : > { %v4741_v15 = vld [vmem:[%s5050_s23 + $0x388] sm:$0xff]   ;;  %v4748_v19 = vld [vmem:[%s5050_s23 + $0x318] sm:$0xff]   ;;  %v4751_v21 = vld [vmem:[%s5050_s23 + $0x3e0] sm:$0xff]  }
 0x930   : > { %v4749_v51 = vld [vmem:[%s5050_s23 + $0x398] sm:$0xff]   ;;  %v4752_v25 = vld [vmem:[%s5050_s23 + $0x320] sm:$0xff]   ;;  %v4756_v30 = vld [vmem:[%s5050_s23 + $0x328] sm:$0xff]  }
 0x931   : > { %4359 = vmatpush3.bf16.msra.mxu0 %v4700_v36  ;;  %4381 = vmatpush3.bf16.msra.mxu1 %v4701_v39  ;;  %v4753_v22 = vld [vmem:[%s5050_s23 + $0x3a0] sm:$0xff]   ;;  %v4757_v31 = vld [vmem:[%s5050_s23 + $0x3a8] sm:$0xff]   ;;  %v4758_v32 = vld [vmem:[%s5050_s23 + $0x370] sm:$0xff]  }
 0x932   : > { %4388 = vmatprep.subr.bf16.mxu0 %v4702_v40  ;;  %4410 = vmatprep.subr.bf16.mxu1 %v4703_v41  ;;  %v4759_v34 = vld [vmem:[%s5050_s23 + $0x3f0] sm:$0xff]   ;;  %v4762_v40 = vld [vmem:[%s5050_s23 + $0x378] sm:$0xff]  }
 0x933   : > { %v4760_v36 = vld [vmem:[%s5050_s23 + $0x330] sm:$0xff]   ;;  %v4763_v41 = vld [vmem:[%s5050_s23 + $0x3f8] sm:$0xff]  }
 0x934   : > { %3390 = vmatmul.mubr.bf16.vlgmr.msra.gmra.mrb[40].mxu0 %v5369_v11  ;;  %3431 = vmatmul.mubr.bf16.vlgmr.msra.gmra.mrb[40].mxu1 %v5371_v12  ;;  %v4711_v11 = vld [vmem:[%s5050_s23 + $0x2d0] sm:$0xff]  }
 0x935   : > { %4389 = vmatpush3.bf16.msra.mxu0 %v4704_v27  ;;  %3471 = vmatprep.mubr.bf16.mxu0 %v5394_v49  ;;  %v4712_v12 = vld [vmem:[%s5050_s23 + $0x210] sm:$0xff]   ;;  %v4718_v49 = vld [vmem:[%s5050_s23 + $0x260] sm:$0xff]   ;;  %v4764_v27 = vld [vmem:[%s5050_s23 + $0x338] sm:$0xff]  }
 0x936   : > { %4411 = vmatpush3.bf16.msra.mxu1 %v4705_v42  ;;  %3512 = vmatprep.mubr.bf16.mxu1 %v5396_v63  ;;  %v4719_v63 = vld [vmem:[%s5050_s23 + $0x2e0] sm:$0xff]   ;;  %v4761_v39 = vld [vmem:[%s5050_s23 + $0x3b0] sm:$0xff]   ;;  %v4765_v42 = vld [vmem:[%s5050_s23 + $0x3b8] sm:$0xff]  }
 0x937   : > { %4390 = vmatprep.subr.bf16.mxu0 %v4706_v28  ;;  %4412 = vmatprep.subr.bf16.mxu1 %v4707_v43 }
 0x939   : > { %4391 = vmatpush3.bf16.msra.mxu0 %v4708_v44  ;;  %v4123_v44 = vld [vmem:[%s796_s16] ss:$0 sm:$0xff] }
 0x93a   : > { %4413 = vmatpush3.bf16.msra.mxu1 %v4709_v45  ;;  %4392 = vmatprep.subr.bf16.mxu0 %v4710_v58 }
 0x93b   : > { %4414 = vmatprep.subr.bf16.mxu1 %v4711_v11 }
 0x93d   : > { %4393 = vmatpush3.bf16.msra.mxu0 %v4712_v12 }
 0x93e   : > { %4415 = vmatpush3.bf16.msra.mxu1 %v4713_v62  ;;  %4394 = vmatprep.subr.bf16.mxu0 %v4714_v47 }
 0x93f   : > { %4416 = vmatprep.subr.bf16.mxu1 %v4715_v48 }
 0x941   : > { %4395 = vmatpush3.bf16.msra.mxu0 %v4716_v54 }
 0x942   : > { %4417 = vmatpush3.bf16.msra.mxu1 %v4717_v56  ;;  %4396 = vmatprep.subr.bf16.mxu0 %v4718_v49 }
 0x943   : > { %4418 = vmatprep.subr.bf16.mxu1 %v4719_v63 }
 0x945   : > { %4397 = vmatpush3.bf16.msra.mxu0 %v4720_v35 }
 0x946   : > { %4419 = vmatpush3.bf16.msra.mxu1 %v4721_v57  ;;  %4398 = vmatprep.subr.bf16.mxu0 %v4722_v52 }
 0x947   : > { %4420 = vmatprep.subr.bf16.mxu1 %v4723_v59 }
 0x949   : > { %4399 = vmatpush3.bf16.msra.mxu0 %v4724_v60 }
 0x94a   : > { %4421 = vmatpush3.bf16.msra.mxu1 %v4725_v0  ;;  %4400 = vmatprep.subr.bf16.mxu0 %v4726_v1 }
 0x94b   : > { %4422 = vmatprep.subr.bf16.mxu1 %v4727_v53 }
 0x94d   : > { %4401 = vmatpush3.bf16.msra.mxu0 %v4728_v2 }
 0x94e   : > { %4423 = vmatpush3.bf16.msra.mxu1 %v4729_v3  ;;  %4402 = vmatprep.subr.bf16.mxu0 %v4730_v4 }
 0x94f   : > { %4424 = vmatprep.subr.bf16.mxu1 %v4731_v5 }
 0x951   : > { %4403 = vmatpush3.bf16.msra.mxu0 %v4732_v6 }
 0x952   : > { %4425 = vmatpush3.bf16.msra.mxu1 %v4733_v55  ;;  %4432 = vmatprep.subr.bf16.mxu0 %v4734_v7 }
 0x953   : > { %4454 = vmatprep.subr.bf16.mxu1 %v4735_v8 }
 0x954   : > { %3472 = vmatmul.mubr.bf16.vlgmr.msra.gmra.mrb[44].mxu0 %v5390_v38  ;;  %v4743_v38 = vld [vmem:[%s5050_s23 + $0x3d0] sm:$0xff]  }
 0x955   : > { %3513 = vmatmul.mubr.bf16.vlgmr.msra.gmra.mrb[44].mxu1 %v5392_v46  ;;  %4433 = vmatpush3.bf16.msra.mxu0 %v4736_v9  ;;  %v4744_v46 = vld [vmem:[%s5050_s23 + $0x310] sm:$0xff]  }
 0x956   : > { %3553 = vmatprep.mubr.bf16.mxu0 %v5412_v26  ;;  %4455 = vmatpush3.bf16.msra.mxu1 %v4737_v10  ;;  %v4754_v26 = vld [vmem:[%s5050_s23 + $0x368] sm:$0xff]  }
 0x957   : > { %3594 = vmatprep.mubr.bf16.mxu1 %v5414_v29  ;;  %4434 = vmatprep.subr.bf16.mxu0 %v4738_v50  ;;  %v4755_v29 = vld [vmem:[%s5050_s23 + $0x3e8] sm:$0xff]  }
 0x958   : > { %4456 = vmatprep.subr.bf16.mxu1 %v4739_v13 }
 0x959   : > { %4435 = vmatpush3.bf16.msra.mxu0 %v4740_v14 }
 0x95a   : > { %4457 = vmatpush3.bf16.msra.mxu1 %v4741_v15  ;;  %4436 = vmatprep.subr.bf16.mxu0 %v4742_v61 }
 0x95b   : > { %4458 = vmatprep.subr.bf16.mxu1 %v4743_v38 }
 0x95d   : > { %4437 = vmatpush3.bf16.msra.mxu0 %v4744_v46 }
 0x95e   : > { %4459 = vmatpush3.bf16.msra.mxu1 %v4745_v16  ;;  %4438 = vmatprep.subr.bf16.mxu0 %v4746_v17 }
 0x95f   : > { %4460 = vmatprep.subr.bf16.mxu1 %v4747_v18 }
 0x961   : > { %4439 = vmatpush3.bf16.msra.mxu0 %v4748_v19 }
 0x962   : > { %4461 = vmatpush3.bf16.msra.mxu1 %v4749_v51  ;;  %4440 = vmatprep.subr.bf16.mxu0 %v4750_v20 }
 0x963   : > { %4462 = vmatprep.subr.bf16.mxu1 %v4751_v21 }
 0x965   : > { %4441 = vmatpush3.bf16.msra.mxu0 %v4752_v25 }
 0x966   : > { %4463 = vmatpush3.bf16.msra.mxu1 %v4753_v22  ;;  %4442 = vmatprep.subr.bf16.mxu0 %v4754_v26 }
 0x967   : > { %4464 = vmatprep.subr.bf16.mxu1 %v4755_v29 }
 0x969   : > { %4443 = vmatpush3.bf16.msra.mxu0 %v4756_v30 }
 0x96a   : > { %4465 = vmatpush3.bf16.msra.mxu1 %v4757_v31  ;;  %4444 = vmatprep.subr.bf16.mxu0 %v4758_v32 }
 0x96b   : > { %4466 = vmatprep.subr.bf16.mxu1 %v4759_v34 }
 0x96d   : > { %4445 = vmatpush3.bf16.msra.mxu0 %v4760_v36 }
 0x96e   : > { %4467 = vmatpush3.bf16.msra.mxu1 %v4761_v39  ;;  %4446 = vmatprep.subr.bf16.mxu0 %v4762_v40 }
 0x96f   : > { %4468 = vmatprep.subr.bf16.mxu1 %v4763_v41 }
 0x971   : > { %4447 = vmatpush3.bf16.msra.mxu0 %v4764_v27 }
 0x972   : > { %4469 = vmatpush3.bf16.msra.mxu1 %v4765_v42 }
 0x974   : > { %3554 = vmatmul.mubr.bf16.vlgmr.msra.gmra.mrb[48].mxu0 %v5408_v23 }
 0x975   : > { %3595 = vmatmul.mubr.bf16.vlgmr.msra.gmra.mrb[48].mxu1 %v5410_v24 }
 0x9e7   : > { %v4316_v28 = vpop.f32.mrb[36].mxu0  ;;  %v4338_v43 = vpop.f32.mrb[36].mxu1 }
 0x9e8   : > { %v4317_v45 = vpop.f32.mrb[37].mxu0  ;;  %v4339_v58 = vpop.f32.mrb[37].mxu1 }
 0x9e9   : > { %v4318_v11 = vadd.f32 %v4317_v45, %v4316_v28  ;;  %v4340_v12 = vadd.f32 %v4339_v58, %v4338_v43  ;;  %v4319_v62 = vpop.f32.mrb[38].mxu0  ;;  %v4341_v47 = vpop.f32.mrb[38].mxu1 }
 0x9ea   : > { %v4320_v48 = vpop.f32.mrb[39].mxu0  ;;  %v4342_v54 = vpop.f32.mrb[39].mxu1 }
 0x9eb   : > { %v3310_v56 = vadd.f32 %v4318_v11, %v4123_v44  ;;  %v4321_v49 = vadd.f32 %v4320_v48, %v4319_v62  ;;  %v4343_v23 = vadd.f32 %v4342_v54, %v4341_v47 }
 0x9ed   : > { %v3351_v63 = vadd.f32 %v4340_v12, %v3310_v56  ;;  %v3313_v24 = vadd.f32 %v4321_v49, %v4123_v44 }
 0x9ef   : > { %v3354_v35 = vadd.f32 %v4343_v23, %v3313_v24 }
 0xa07   : > { %v4360_v57 = vpop.f32.mrb[40].mxu0  ;;  %v4382_v52 = vpop.f32.mrb[40].mxu1 }
 0xa08   : > { %v4361_v59 = vpop.f32.mrb[41].mxu0  ;;  %v4383_v60 = vpop.f32.mrb[41].mxu1 }
 0xa09   : > { %v4362_v0 = vadd.f32 %v4361_v59, %v4360_v57  ;;  %v4384_v1 = vadd.f32 %v4383_v60, %v4382_v52  ;;  %v4363_v53 = vpop.f32.mrb[42].mxu0  ;;  %v4385_v2 = vpop.f32.mrb[42].mxu1 }
 0xa0a   : > { %v4364_v3 = vpop.f32.mrb[43].mxu0  ;;  %v4386_v4 = vpop.f32.mrb[43].mxu1 }
 0xa0b   : > { %v3392_v5 = vadd.f32 %v4362_v0, %v3351_v63  ;;  %v4365_v6 = vadd.f32 %v4364_v3, %v4363_v53  ;;  %v4387_v55 = vadd.f32 %v4386_v4, %v4385_v2 }
 0xa0d   : > { %v3433_v7 = vadd.f32 %v4384_v1, %v3392_v5  ;;  %v3395_v8 = vadd.f32 %v4365_v6, %v3354_v35  ;;  %v4252_v5 = vld [vmem:[%s799_s3] ss:$0 sm:$0xff] }
 0xa0f   : > { %v3436_v9 = vadd.f32 %v4387_v55, %v3395_v8  ;;  %v4253_v8 = vld [vmem:[%s802_s21] ss:$0 sm:$0xff] }
 0xa27   : > { %v4404_v10 = vpop.f32.mrb[44].mxu0 }
 0xa28   : > { %v4426_v50 = vpop.f32.mrb[44].mxu1  ;;  %v4405_v13 = vpop.f32.mrb[45].mxu0 }
 0xa29   : > { %v4406_v14 = vadd.f32 %v4405_v13, %v4404_v10  ;;  %v4427_v15 = vpop.f32.mrb[45].mxu1  ;;  %v4407_v61 = vpop.f32.mrb[46].mxu0 }
 0xa2a   : > { %v4428_v38 = vadd.f32 %v4427_v15, %v4426_v50  ;;  %v4429_v46 = vpop.f32.mrb[46].mxu1  ;;  %v4408_v16 = vpop.f32.mrb[47].mxu0  ;;  %v4790_v15 = vld [vmem:[%s5642_s1] sm:$0xff] (!%p4254_p6)  }
 0xa2b   : > { %v3474_v17 = vadd.f32 %v4406_v14, %v3433_v7  ;;  %v4409_v18 = vadd.f32 %v4408_v16, %v4407_v61  ;;  %v4430_v19 = vpop.f32.mrb[47].mxu1  ;;  %v4874_v61 = vmov (!%p4254_p6), 0.0   ;;  %v4793_v16 = vld [vmem:[%s5643_s28 + $0x8] sm:$0xff] (!%p4254_p6)  }
 0xa2c   : > { %v4431_v51 = vadd.f32 %v4430_v19, %v4429_v46  ;;  %4558 = vmatprep.subr.bf16.mxu0 (!%p4254_p6), %v4874_v61  ;;  %4566 = vmatprep.subr.bf16.mxu1 (!%p4254_p6), %v4874_v61  ;;  %v4792_v46 = vld [vmem:[%s5643_s28] sm:$0xff] (!%p4254_p6)   ;;  %v4795_v19 = vld [vmem:[%s5643_s28 + $0x18] sm:$0xff] (!%p4254_p6)  }
 0xa2d   : > { %v3515_v20 = vadd.f32 %v4428_v38, %v3474_v17  ;;  %v3477_v21 = vadd.f32 %v4409_v18, %v3436_v9  ;;  %v4791_v38 = vld [vmem:[%s5642_s1 + $0x8] sm:$0xff] (!%p4254_p6)   ;;  %4559 = vmatpush3.bf16.msra.mxu0 (!%p4254_p6), %v4790_v15  ;;  %4562 = vmatprep.mubr.msk.bf16.mxu0 (!%p4254_p6), %vm4875_vm14, %v4874_v61  ;;  %v4794_v18 = vld [vmem:[%s5643_s28 + $0x10] sm:$0xff] (!%p4254_p6)  }
 0xa2e   : > { %4560 = vmatprep.subr.bf16.mxu0 (!%p4254_p6), %v4874_v61  ;;  %4582 = vmatprep.mubr.msk.bf16.mxu1 (!%p4254_p6), %vm4875_vm14, %v4874_v61 }
 0xa2f   : > { %v3518_v25 = vadd.f32 %v4431_v51, %v3477_v21  ;;  %4567 = vmatpush3.bf16.msra.mxu1 (!%p4254_p6), %v4792_v46  ;;  %v4796_v51 = vld [vmem:[%s5643_s28 + $0x20] sm:$0xff] (!%p4254_p6)   ;;  %v4798_v21 = vld [vmem:[%s5643_s28 + $0x30] sm:$0xff] (!%p4254_p6)  }
 0xa30   : > { %4568 = vmatprep.subr.bf16.mxu1 (!%p4254_p6), %v4874_v61 }
 0xa31   : > { %4561 = vmatpush3.bf16.msra.mxu0 (!%p4254_p6), %v4791_v38 }
 0xa33   : > { %4569 = vmatpush3.bf16.msra.mxu1 (!%p4254_p6), %v4793_v16 }
 0xa34   : > { %4570 = vmatprep.subr.bf16.mxu1 (!%p4254_p6), %v4874_v61 }
 0xa37   : > { %4571 = vmatpush3.bf16.msra.mxu1 (!%p4254_p6), %v4794_v18 }
 0xa38   : > { %4572 = vmatprep.subr.bf16.mxu1 (!%p4254_p6), %v4874_v61 }
 0xa3b   : > { %4573 = vmatpush3.bf16.msra.mxu1 (!%p4254_p6), %v4795_v19 }
 0xa3c   : > { %4574 = vmatprep.subr.bf16.mxu1 (!%p4254_p6), %v4874_v61 }
 0xa3f   : > { %4575 = vmatpush3.bf16.msra.mxu1 (!%p4254_p6), %v4796_v51 }
 0xa40   : > { %4576 = vmatprep.subr.bf16.mxu1 (!%p4254_p6), %v4874_v61 }
 0xa47   : > { %v4448_v22 = vpop.f32.mrb[48].mxu0 }
 0xa48   : > { %v4470_v26 = vpop.f32.mrb[48].mxu1  ;;  %v4449_v29 = vpop.f32.mrb[49].mxu0 }
 0xa49   : > { %v4450_v30 = vadd.f32 %v4449_v29, %v4448_v22  ;;  %v4471_v31 = vpop.f32.mrb[49].mxu1  ;;  %v4451_v32 = vpop.f32.mrb[50].mxu0  ;;  %v4255_v22 = vld [vmem:[%s5644_s26] ss:$0 sm:$0xff] (!%p4254_p6) }
 0xa4a   : > { %v4472_v34 = vadd.f32 %v4471_v31, %v4470_v26  ;;  %v4473_v36 = vpop.f32.mrb[50].mxu1  ;;  %v4452_v39 = vpop.f32.mrb[51].mxu0 }
 0xa4b   : > { %v3556_v40 = vadd.f32 %v4450_v30, %v3515_v20  ;;  %v4453_v41 = vadd.f32 %v4452_v39, %v4451_v32  ;;  %v4474_v27 = vpop.f32.mrb[51].mxu1  ;;  %v4797_v20 = vld [vmem:[%s5643_s28 + $0x28] sm:$0xff] (!%p4254_p6)  }
 0xa4c   : > { %v4475_v42 = vadd.f32 %v4474_v27, %v4473_v36  ;;  %4577 = vmatpush3.bf16.msra.mxu1 (!%p4254_p6), %v4797_v20 }
 0xa4d   : > { %v3597_v28 = vadd.f32 %v4472_v34, %v3556_v40  ;;  %v3559_v43 = vadd.f32 %v4453_v41, %v3518_v25  ;;  %4578 = vmatprep.subr.bf16.mxu1 (!%p4254_p6), %v4874_v61  ;;  %v4799_v25 = vld [vmem:[%s5643_s28 + $0x38] sm:$0xff] (!%p4254_p6)   ;;  %v4259_v41 = vld [vmem:[%s5645_s2] ss:$0 sm:$0xff] (!%p4254_p6) }
 0xa4f   : > { %v3603_v44 = vadd.f32 %v3597_v28, %v5250_v33  ;;  %v3600_v45 = vadd.f32 %v4475_v42, %v3559_v43 }
 0xa50   : > { %4579 = vmatpush3.bf16.msra.mxu1 (!%p4254_p6), %v4798_v21 }
 0xa51   : > { %v3604_v58 = vadd.f32 %v3600_v45, %v5248_v37  ;;  %v3607_v11 = vsel %vm927_vm8, %v3603_v44, 0.0  ;;  %v3615_v12 = vmul.f32 %v3603_v44, %v3603_v44  ;;  %4580 = vmatprep.subr.bf16.mxu1 (!%p4254_p6), %v4874_v61 }
 0xa52   : > { %3608 = vadd.xlane.f32.xlu0 %v3607_v11 }
 0xa53   : > { %v3610_v62 = vsel %vm927_vm8, %v3604_v58, 0.0  ;;  %v3616_v47 = vmul.f32 %v3604_v58, %v3604_v58  ;;  %v3617_v48 = vsel %vm927_vm8, %v3615_v12, 0.0 }
 0xa54   : > { %3611 = vadd.xlane.f32.xlu1 %v3610_v62  ;;  %4581 = vmatpush3.bf16.msra.mxu1 (!%p4254_p6), %v4799_v25 }
 0xa55   : > { %v3620_v54 = vsel %vm927_vm8, %v3616_v47, 0.0 }
 0xa56   : > { %3618 = vadd.xlane.f32.xlu0 %v3617_v48 }
 0xa58   : > { %3621 = vadd.xlane.f32.xlu1 %v3620_v54 }
 0xadf   : > { %v3609_v56 = vpop.xlane.xlu0 %3608 }
 0xae0   : > { %v3613_v49 = vmul.f32 0.03125, %v3609_v56 }
 0xae1   : > { %v3612_v33 = vpop.xlane.xlu1 %3611 }
 0xae2   : > { %v3614_v23 = vmul.f32 0.03125, %v3612_v33  ;;  %v3625_v37 = vmul.f32 %v3613_v49, %v3613_v49  ;;  %v3631_v3 = vsub.f32 %v3603_v44, %v3613_v49 }
 0xae3   : > { %v3619_v63 = vpop.xlane.xlu0 %3618 }
 0xae4   : > { %v3623_v24 = vmul.f32 0.03125, %v3619_v63  ;;  %v3626_v57 = vmul.f32 %v3614_v23, %v3614_v23  ;;  %v3632_v6 = vsub.f32 %v3604_v58, %v3614_v23 }
 0xae5   : > { %v3622_v35 = vpop.xlane.xlu1 %3621 }
 0xae6   : > { %v3627_v52 = vsub.f32 %v3623_v24, %v3625_v37  ;;  %v3624_v59 = vmul.f32 0.03125, %v3622_v35 }
 0xae8   : > { %v3629_v60 = vmax.f32 %v3627_v52, 0.0  ;;  %v3628_v0 = vsub.f32 %v3624_v59, %v3626_v57 }
 0xaea   : > { %v3633_v1 = vadd.f32 1e-05, %v3629_v60  ;;  %v3630_v53 = vmax.f32 %v3628_v0, 0.0 }
 0xaec   : > { %4786 = vrsqrt.f32 %v3633_v1  ;;  %v3634_v2 = vadd.f32 1e-05, %v3630_v53 }
 0xaee   : > { %4788 = vrsqrt.f32 %v3634_v2 }
 0xaf6   : > { %v4787_v4 = vpop.eup %4786 }
 0xaf7   : > { %v3637_v55 = vmul.f32 %v4787_v4, %v3631_v3 }
 0xaf8   : > { %v4789_v7 = vpop.eup %4788 }
 0xaf9   : > { %v3645_v9 = vmul.f32 %v4252_v5, %v3637_v55  ;;  %v3638_v10 = vmul.f32 %v4789_v7, %v3632_v6  ;;  %3660 = sbr.rel (%p4254_p6) target bundleno = 3282 (0xcd2), region = 104 }
 0xafb   : > { %v3653_v50 = vadd.f32 %v4253_v8, %v3645_v9  ;;  %v3646_v13 = vmul.f32 %v4252_v5, %v3638_v10 }
 0xafd   : > { %3655 = vst.msk [vmem:[#allocation2] sm:$0xff] %vm927_vm8, %v3653_v50  ;;  %v3654_v14 = vadd.f32 %v4253_v8, %v3646_v13 }
 0xaff   : > { %3656 = vst.msk [vmem:[#allocation2 + $0x8] sm:$0xff] %vm927_vm8, %v3654_v14  ;;  %v3665_v17 = vpack.c.bf16 (!%p4254_p6), %v3654_v14, %v3653_v50 }
 0xb01   : > { %4563 = vmatmul.mubr.msk.bf16.vlgmr.msra.gmra.mrb[0].mxu0 %vm927_vm8, %v3665_v17 }
 0xbd4   : > { %v3722_v26 = vpop.f32.mrb[0].mxu0 }
 0xbd5   : > { %v3723_v29 = vadd.f32 %v4255_v22, %v3722_v26  ;;  %v4564_v30 = vpop.f32.mrb[1].mxu0 }
 0xbd6   : > { %v3725_v31 = vpop.f32.mrb[2].mxu0 }
 0xbd7   : > { %v3726_v32 = vadd.f32 %v4255_v22, %v3725_v31  ;;  %v4565_v34 = vpop.f32.mrb[3].mxu0  ;;  %v3729_v36 = vmax.f32 %v3723_v29, 0.0 }
 0xbd9   : > { %v3730_v39 = vmax.f32 %v3726_v32, 0.0 }
 0xbdb   : > { %v3747_v40 = vpack.c.bf16 %v3730_v39, %v3729_v36 }
 0xbdd   : > { %4583 = vmatmul.mubr.bf16.vlgmr.msra.gmra.mrb[0].mxu1 %v3747_v40 }
 0xcb0   : > { %v3837_v27 = vpop.f32.mrb[0].mxu1 }
 0xcb1   : > { %v3838_v42 = vadd.f32 %v4259_v41, %v3837_v27  ;;  %v4584_v28 = vpop.f32.mrb[1].mxu1 }
 0xcb2   : > { %v3840_v43 = vpop.f32.mrb[2].mxu1 }
 0xcb3   : > { %v3844_v44 = vsub.f32 0.0, %v3838_v42  ;;  %v3841_v45 = vadd.f32 %v4259_v41, %v3840_v43  ;;  %v4585_v58 = vpop.f32.mrb[3].mxu1 }
 0xcb5   : > { %v3846_v11 = vmul.f32 1.442695, %v3844_v44  ;;  %v3845_v12 = vsub.f32 0.0, %v3841_v45 }
 0xcb7   : > { %4800 = vpow2.f32 %v3846_v11  ;;  %v3848_v62 = vmul.f32 1.442695, %v3845_v12 }
 0xcb9   : > { %4802 = vpow2.f32 %v3848_v62 }
 0xcc1   : > { %v4801_v47 = vpop.eup %4800 }
 0xcc2   : > { %v3850_v48 = vadd.f32 1.0, %v4801_v47 }
 0xcc3   : > { %v4803_v54 = vpop.eup %4802 }
 0xcc4   : > { %4804 = vrcp.f32 %v3850_v48  ;;  %v3851_v56 = vadd.f32 1.0, %v4803_v54 }
 0xcc6   : > { %4806 = vrcp.f32 %v3851_v56 }
 0xcce   : > { %v4805_v49 = vpop.eup %4804 }
 0xccf   : > { %3856 = vst [vmem:[#allocation5] sm:$0xff] %v4805_v49 }
 0xcd0   : > { %v4807_v33 = vpop.eup %4806 }
 0xcd1   : > { %3857 = vst [vmem:[#allocation5 + $0x8] sm:$0xff] %v4807_v33 }
 0xcd2 PF: > { %s5646_s29 = sld [smem:[#allocation9_spill]]  ;;  %s4876_s17 = smov [#allocation5]  }
 0xcd3   : > { %s3867_s5 = sshll.u32 %s4876_s17, 4  ;;  %s3868_s5 = int_to_ptr.vmem [resolvable:$true] %s3867_s5 }
 0xcd4   : > { %s4808_s15 = scalar_lea.vmem %s3868_s5, 256  ;;  %p4815_p11 = scmp.lt.s32.totalorder %s3868_s5, %s3868_s5 }
 0xcd5   : > { %p4809_p8 = scmp.ne.s32.totalorder %s3868_s5, %s4808_s15  ;;  %p4816_p12 = scmp.lt.s32.totalorder %s4808_s15, %s4808_s15 }
 0xcd7   : > { %p4817_p13 = por %p4816_p12, %p4815_p11 }
 0xcd8   : > { %s5647_s20 = sadd.s32 4294967295, %s5646_s29  }
 0xcd9   : > { %p5559_p7 = scmp.eq.s32.totalorder %s5647_s20, 1 }
 0xcdb   : > { %p4810_p9 = pnand %p4809_p8, %p5559_p7 }
 0xcdd   : > { %p4811_p10 = pneg %p4810_p9 }
 0xcdf   : > { %p4818_p0 = pnand %p4817_p13, %p4811_p10 }
 0xce1   : > { %4821 = shalt.err (!%p4818_p0)
}
 0xce2   : > { %s5649_s25 = sld [smem:[#allocation20_spill]] }
 0xce8   : > { %s4822_s18 = scalar_lea.hbm %s5649_s25, 256 }
 0xce9   : > { %p4823_p1 = scmp.ne.s32.totalorder %s5649_s25, %s4822_s18  ;;  %p4828_p4 = scmp.lt.u32.totalorder %s4822_s18, %s5649_s25 }
 0xceb   : > { %p4824_p2 = pnand %p4823_p1, %p5559_p7 }
 0xced   : > { %p4825_p3 = pneg %p4824_p2 }
 0xcef   : > { %p4830_p5 = pnand %p4828_p4, %p4825_p3 }
 0xcf1   : > { %4833 = shalt.err (!%p4830_p5)
}
 0xcf2   : > { %s4877_s26 = smov 128   ;;  %s4878_s27 = smov 8  }
 0xcf3   : > { %4587 = dma.vmem_to_hbm [thread:$0]  (%p5559_p7), %s3868_s5, 256, %s5649_s25, [#allocation6], %s4877_s26, %s4877_s26, %s4878_s27  }
 0xcf4   : > { %4847 = dma.done.wait (%p5559_p7), [#allocation6], 256  }
 0xcf5   : > { %4849 = vsyncadd (%p5559_p7), [#allocation6], 4294967040 }
 0xcf6 PF: > { %s5650_s29 = sld [smem:[#allocation9_spill]]  ;;  %s5651_s0 = sld [smem:[#allocation8_spill]] }
 0xcf7   : > { %s5652_s30 = sld [smem:[#allocation10_spill]] }
 0xcfc   : > { %s30_s20 = sadd.s32 1, %s5650_s29  }
 0xcfd   : > { %p27_p6 = scmp.ge.s32.totalorder %s30_s20, 4  }
 0xcff   :  { %29 = sbr.rel (!%p27_p6) target bundleno = 13 (0xd), region = 168 }
 0xd06   :  { %3883 = vsyncpa [#allocation6], 1 }
 0xd07   :  { %3885 = vsyncpa [#allocation6 + $0x1], 1 }

</bundles_post_ra>
